<compile_context>
chip_gen: v5e
topology: v5e:2x2
jax: 0.10.0
libtpu: 0.0.40
codegen_flags: <defaults>
</compile_context>

<pallas_src>
import functools

import jax
import jax.numpy as jnp
from jax.experimental import pallas as pl
from jax.experimental.pallas import tpu as pltpu


_VMEM_BUDGET = 24 * 1024 * 1024     # per-step working-set budget (fits v7x's 64 MiB TC)
_VMEM_LIMIT = 64 * 1024 * 1024      # scoped VMEM limit handed to Mosaic
_IM2COL_MAX_CIN = 32                # below this, one K=9*Cin matmul; above, 9 K=Cin matmuls


def _round_up(v, m):
    return (v + m - 1) // m * m


def _conv_rows(xw_ref, w_ref, *, br, wo, cin, cout_p):
    """3x3 conv of one (br+2)-row input window -> (br*wo, cout_p) f32 rows."""
    xw = xw_ref[0]                                            # (br+2, wpad, cin) bf16
    if cin <= _IM2COL_MAX_CIN:
        # Small Cin: im2col-concatenate so the MXU sees one K=9*Cin matmul.
        cols = []
        for kh in range(3):                                   # vertical taps (in-VMEM)
            v = xw[kh:kh + br]                                # (br, wpad, cin)
            for kw in range(3):                               # horizontal taps (in-VMEM)
                cols.append(v[:, kw:kw + wo, :])              # (br, wo, cin)
        patches = jnp.concatenate(cols, axis=-1).reshape(br * wo, 9 * cin)
        return jnp.dot(patches, w_ref[...], preferred_element_type=jnp.float32)
    # Large Cin: per-tap accumulation — avoids the VMEM concatenate/relayout and feeds
    # the MXU directly with 9 K=Cin matmuls.
    w = w_ref[...]
    acc = jnp.zeros((br * wo, cout_p), jnp.float32)
    for kh in range(3):
        v = xw[kh:kh + br]
        for kw in range(3):
            t = kh * 3 + kw
            tap = v[:, kw:kw + wo, :].reshape(br * wo, cin)
            acc = acc + jnp.dot(tap, w[t * cin:(t + 1) * cin, :],
                                preferred_element_type=jnp.float32)
    return acc


def _conv3x3_stats_kernel(xw_ref, w_ref, ssum_ref, sm2_ref, *,
                          br, wo, cin, cout_p, ho, bpi):
    """Pass 1: per-tile BN partials (column sum + centered M2) of the conv output."""
    y = _conv_rows(xw_ref, w_ref, br=br, wo=wo, cin=cin, cout_p=cout_p)   # (br*wo, cout_p)
    if ho % br == 0:
        # No height-padding rows in any tile.
        s = jnp.sum(y, axis=0, keepdims=True)                             # (1, cout_p)
        mean_t = s * (1.0 / float(br * wo))
        d = y - mean_t
        m2 = jnp.sum(d * d, axis=0, keepdims=True)
    else:
        # The last tile of each image contains zero-padded output rows; mask them.
        i = pl.program_id(0)
        blk = jax.lax.rem(i, jnp.int32(bpi))
        valid = jnp.minimum(jnp.int32(br), jnp.int32(ho) - blk * jnp.int32(br))
        rows = jax.lax.broadcasted_iota(jnp.int32, (br * wo, 1), 0)
        mask = rows < valid * wo
        ym = jnp.where(mask, y, 0.0)
        s = jnp.sum(ym, axis=0, keepdims=True)
        cnt = (valid * wo).astype(jnp.float32)
        mean_t = s / cnt
        d = jnp.where(mask, y - mean_t, 0.0)
        m2 = jnp.sum(d * d, axis=0, keepdims=True)
    ssum_ref[...] = s.reshape(1, 1, cout_p)
    sm2_ref[...] = m2.reshape(1, 1, cout_p)


def _conv3x3_bn_relu_kernel(xw_ref, w_ref, scale_ref, shift_ref, o_ref, *,
                            br, wo, cin, cout_p, relu):
    """Pass 2: fused conv + BN(affine) + ReLU, written straight to the output."""
    y = _conv_rows(xw_ref, w_ref, br=br, wo=wo, cin=cin, cout_p=cout_p)   # (br*wo, cout_p)
    out = y * scale_ref[...] + shift_ref[...]
    if relu:
        out = jnp.maximum(out, 0.0)
    o_ref[...] = out.reshape(br, wo, cout_p)


def basic_conv_block(x_nchw, w_hwio, gamma, beta, *, eps=1e-5, use_relu=True,
                     block_rows=None):
    """Forward of BasicConvBlock(in, out, kernel_size=3, stride=1, padding=1,
    use_bn=True, use_relu=True) in training mode (batch statistics).

    x_nchw : (N, Cin, H, W) f32   -- PyTorch NCHW layout.
    w_hwio : (3, 3, Cin, Cout)    -- PyTorch weight (Cout, Cin, kh, kw).transpose(2,3,1,0).
    gamma, beta : (Cout,)         -- BatchNorm affine parameters.
    Returns (N, Cout, H, W) f32.
    """
    # TODO(synk): only the default config (k=3, s=1, p=1, use_bn=True) is lowered;
    # stride != 1 and the use_bn=False (conv-bias) path are not implemented here.
    n, cin, h, w = x_nchw.shape
    assert w_hwio.shape[:3] == (3, 3, cin), w_hwio.shape
    cout = w_hwio.shape[-1]
    ho, wo = h, w                                  # stride 1, pad 1, k 3
    wpad = w + 2
    cout_p = _round_up(cout, 128)                  # lane-dense weight / output columns

    # --- tile sizing: ~1024 matmul rows per step, rows multiple of 8, VMEM-budgeted ---
    if block_rows is None:
        br = min(_round_up(ho, 8), max(8, _round_up(max(1, 1024 // max(1, wo)), 8)))
    else:
        br = max(8, _round_up(int(block_rows), 8))

    def _step_bytes(b):
        window = (b + 2) * wpad * cin * 2          # bf16 input window block
        out_blk = b * wo * cout_p * 4              # f32 output block
        w_blk = 9 * cin * cout_p * 2               # bf16 weight block
        scratch = b * wo * (9 * cin * 2 + 2 * cout_p * 4)   # patches + f32 temporaries
        return 2 * (window + out_blk + w_blk) + scratch     # double-buffered pipeline

    while br > 8 and _step_bytes(br) > _VMEM_BUDGET:
        br = max(8, _round_up(br // 2, 8))

    bpi = int(pl.cdiv(ho, br))                     # row-blocks per image
    ho_pad = bpi * br
    nblocks = n * bpi

    # --- wrapper-side layout prep: cast to bf16 FIRST, then transpose/pad/window ---
    xb = jnp.transpose(x_nchw.astype(jnp.bfloat16), (0, 2, 3, 1))          # NHWC bf16
    xp = jnp.pad(xb, ((0, 0), (1, 1 + ho_pad - ho), (1, 1), (0, 0)))       # (n, ho_pad+2, wpad, cin)
    # Overlapping (br+2)-row windows: ~(br+2)/br duplication instead of the old 3x taps.
    # TODO(synk): a manual halo DMA (memory_space=pl.ANY + pltpu.make_async_copy) would
    # remove even this small duplication.
    xw = jnp.stack([xp[:, b * br: b * br + br + 2] for b in range(bpi)], axis=1)
    xw = xw.reshape(nblocks, br + 2, wpad, cin)

    wmat = w_hwio.reshape(9 * cin, cout)                                   # rows = (kh, kw, cin)
    wmat = jnp.pad(wmat, ((0, 0), (0, cout_p - cout))).astype(jnp.bfloat16)

    win_spec = pl.BlockSpec((1, br + 2, wpad, cin), lambda i: (i, 0, 0, 0))
    # TODO(synk): the weight index_map is constant, so Pallas fetches it once; a
    # pipeline_mode=pl.Buffered(1) would also halve its VMEM reservation.
    w_spec = pl.BlockSpec((9 * cin, cout_p), lambda i: (0, 0))
    stat_spec = pl.BlockSpec((1, 1, cout_p), lambda i: (i, 0, 0))
    cparams = pltpu.CompilerParams(dimension_semantics=("parallel",),
                                   vmem_limit_bytes=_VMEM_LIMIT)

    # --- pass 1: stats only (no conv-output HBM round trip) ---
    ssum, sm2 = pl.pallas_call(
        functools.partial(_conv3x3_stats_kernel, br=br, wo=wo, cin=cin,
                          cout_p=cout_p, ho=ho, bpi=bpi),
        grid=(nblocks,),
        in_specs=[win_spec, w_spec],
        out_specs=[stat_spec, stat_spec],
        out_shape=[jax.ShapeDtypeStruct((nblocks, 1, cout_p), jnp.float32),
                   jax.ShapeDtypeStruct((nblocks, 1, cout_p), jnp.float32)],
        compiler_params=cparams,
    )(xw, wmat)

    # --- tiny cross-tile reduction (Chan parallel-variance combine), f32 ---
    cnt = jnp.asarray([min(br, ho - (b % bpi) * br) * wo for b in range(nblocks)],
                      jnp.float32).reshape(nblocks, 1)
    total = jnp.float32(n * ho * wo)
    s2 = ssum.reshape(nblocks, cout_p)
    m2 = sm2.reshape(nblocks, cout_p)
    mean = jnp.sum(s2, axis=0) / total
    mean_t = s2 / cnt
    var = (jnp.sum(m2, axis=0)
           + jnp.sum(cnt * jnp.square(mean_t - mean[None, :]), axis=0)) / total
    var = jnp.maximum(var, 0.0)
    gamma_p = jnp.pad(gamma.astype(jnp.float32), (0, cout_p - cout))
    beta_p = jnp.pad(beta.astype(jnp.float32), (0, cout_p - cout))
    inv = gamma_p * jax.lax.rsqrt(var + jnp.float32(eps))
    scale = inv.reshape(1, cout_p)
    shift = (beta_p - mean * inv).reshape(1, cout_p)
    # TODO(synk): BatchNorm running-stat (momentum) updates are not modeled; eval-mode
    # BN would feed running-stat-derived scale/shift here and skip pass 1.

    # --- pass 2: fused conv + BN + ReLU, lane-dense (cout_p) output ---
    out = pl.pallas_call(
        functools.partial(_conv3x3_bn_relu_kernel, br=br, wo=wo, cin=cin,
                          cout_p=cout_p, relu=use_relu),
        grid=(nblocks,),
        in_specs=[win_spec, w_spec,
                  pl.BlockSpec((1, cout_p), lambda i: (0, 0)),
                  pl.BlockSpec((1, cout_p), lambda i: (0, 0))],
        out_specs=pl.BlockSpec((br, wo, cout_p), lambda i: (i, 0, 0)),
        out_shape=jax.ShapeDtypeStruct((nblocks * br, wo, cout_p), jnp.float32),
        compiler_params=cparams,
    )(xw, wmat, scale, shift)

    out = out.reshape(n, ho_pad, wo, cout_p)[:, :ho, :, :cout]
    return jnp.transpose(out, (0, 3, 1, 2))


if __name__ == "__main__":
    key = jax.random.PRNGKey(0)
    k_x, k_w, k_g, k_b = jax.random.split(key, 4)
    N, Cin, H, W = 2, 4, 16, 16
    Cout = 32

    x = jax.random.normal(k_x, (N, Cin, H, W), jnp.float32)
    w_hwio = jax.random.normal(k_w, (3, 3, Cin, Cout), jnp.float32) * (2.0 / (9 * Cin)) ** 0.5
    gamma = 1.0 + 0.1 * jax.random.normal(k_g, (Cout,), jnp.float32)
    beta = 0.1 * jax.random.normal(k_b, (Cout,), jnp.float32)

    fwd = jax.jit(basic_conv_block)
    out = fwd(x, w_hwio, gamma, beta)
    jax.block_until_ready(out)

    assert out.shape == (N, Cout, H, W), out.shape
    assert out.dtype == jnp.float32

    # Reference: XLA conv (same bf16 operand cast, f32 accumulation) + train-mode
    # BatchNorm + ReLU.  Random (non-zero) weights so layout bugs would be caught.
    xr = jnp.transpose(x, (0, 2, 3, 1)).astype(jnp.bfloat16)
    yr = jax.lax.conv_general_dilated(
        xr, w_hwio.astype(jnp.bfloat16), window_strides=(1, 1),
        padding=((1, 1), (1, 1)), dimension_numbers=("NHWC", "HWIO", "NHWC"),
        preferred_element_type=jnp.float32)
    mu = jnp.mean(yr, axis=(0, 1, 2))
    var = jnp.mean(jnp.square(yr - mu), axis=(0, 1, 2))
    ref = jnp.maximum((yr - mu) * jax.lax.rsqrt(var + 1e-5) * gamma + beta, 0.0)
    ref = jnp.transpose(ref, (0, 3, 1, 2))

    err = float(jnp.max(jnp.abs(out - ref)))
    assert err < 3e-2, f"max abs err vs reference: {err}"
    print("KERNEL_OK")
</pallas_src>

<mosaic_0001>
module attributes {stable_mosaic.version = 11 : i64} {
  func.func @_conv3x3_stats_kernel(%arg0: i32, %arg1: memref<1x18x18x4xbf16, #tpu.memory_space<vmem>>, %arg2: memref<36x128xbf16, #tpu.memory_space<vmem>>, %arg3: memref<1x1x128xf32, #tpu.memory_space<vmem>>, %arg4: memref<1x1x128xf32, #tpu.memory_space<vmem>>) attributes {dimension_semantics = [#tpu.dimension_semantics<parallel>], iteration_bounds = array<i64: 2>, scalar_prefetch = 0 : i64, scratch_operands = 0 : i64, tpu.core_type = #tpu.core_type<tc>, window_params = [{transform_indices = @transform_0, window_bounds = array<i64: 1, 18, 18, 4>}, {pipeline_mode = #tpu.pipeline_mode<synchronous>, transform_indices = @transform_1, window_bounds = array<i64: 36, 128>}, {transform_indices = @transform_2, window_bounds = array<i64: 1, 1, 128>}, {transform_indices = @transform_3, window_bounds = array<i64: 1, 1, 128>}]} {
    %c0 = arith.constant 0 : index
    %c0_0 = arith.constant 0 : index
    %c0_1 = arith.constant 0 : index
    %c0_2 = arith.constant 0 : index
    %0 = vector.load %arg1[%c0, %c0_0, %c0_1, %c0_2] : memref<1x18x18x4xbf16, #tpu.memory_space<vmem>>, vector<1x18x18x4xbf16>
    %1 = vector.shape_cast %0 : vector<1x18x18x4xbf16> to vector<18x18x4xbf16>
    %2 = vector.extract_strided_slice %1 {offsets = [0, 0, 0], sizes = [16, 18, 4], strides = [1, 1, 1]} : vector<18x18x4xbf16> to vector<16x18x4xbf16>
    %3 = vector.extract_strided_slice %2 {offsets = [0, 0, 0], sizes = [16, 16, 4], strides = [1, 1, 1]} : vector<16x18x4xbf16> to vector<16x16x4xbf16>
    %4 = vector.extract_strided_slice %2 {offsets = [0, 1, 0], sizes = [16, 16, 4], strides = [1, 1, 1]} : vector<16x18x4xbf16> to vector<16x16x4xbf16>
    %5 = vector.extract_strided_slice %2 {offsets = [0, 2, 0], sizes = [16, 16, 4], strides = [1, 1, 1]} : vector<16x18x4xbf16> to vector<16x16x4xbf16>
    %6 = vector.extract_strided_slice %1 {offsets = [1, 0, 0], sizes = [16, 18, 4], strides = [1, 1, 1]} : vector<18x18x4xbf16> to vector<16x18x4xbf16>
    %7 = vector.extract_strided_slice %6 {offsets = [0, 0, 0], sizes = [16, 16, 4], strides = [1, 1, 1]} : vector<16x18x4xbf16> to vector<16x16x4xbf16>
    %8 = vector.extract_strided_slice %6 {offsets = [0, 1, 0], sizes = [16, 16, 4], strides = [1, 1, 1]} : vector<16x18x4xbf16> to vector<16x16x4xbf16>
    %9 = vector.extract_strided_slice %6 {offsets = [0, 2, 0], sizes = [16, 16, 4], strides = [1, 1, 1]} : vector<16x18x4xbf16> to vector<16x16x4xbf16>
    %10 = vector.extract_strided_slice %1 {offsets = [2, 0, 0], sizes = [16, 18, 4], strides = [1, 1, 1]} : vector<18x18x4xbf16> to vector<16x18x4xbf16>
    %11 = vector.extract_strided_slice %10 {offsets = [0, 0, 0], sizes = [16, 16, 4], strides = [1, 1, 1]} : vector<16x18x4xbf16> to vector<16x16x4xbf16>
    %12 = vector.extract_strided_slice %10 {offsets = [0, 1, 0], sizes = [16, 16, 4], strides = [1, 1, 1]} : vector<16x18x4xbf16> to vector<16x16x4xbf16>
    %13 = vector.extract_strided_slice %10 {offsets = [0, 2, 0], sizes = [16, 16, 4], strides = [1, 1, 1]} : vector<16x18x4xbf16> to vector<16x16x4xbf16>
    %14 = tpu.concatenate %3, %4, %5, %7, %8, %9, %11, %12, %13 in 2 : vector<16x16x4xbf16>, vector<16x16x4xbf16>, vector<16x16x4xbf16>, vector<16x16x4xbf16>, vector<16x16x4xbf16>, vector<16x16x4xbf16>, vector<16x16x4xbf16>, vector<16x16x4xbf16>, vector<16x16x4xbf16> -> vector<16x16x36xbf16>
    %15 = vector.shape_cast %14 : vector<16x16x36xbf16> to vector<256x36xbf16>
    %c0_3 = arith.constant 0 : index
    %c0_4 = arith.constant 0 : index
    %16 = vector.load %arg2[%c0_3, %c0_4] : memref<36x128xbf16, #tpu.memory_space<vmem>>, vector<36x128xbf16>
    %cst = arith.constant dense<0.000000e+00> : vector<256x128xf32>
    %17 = tpu.matmul %15, %16, %cst {dimension_numbers = #tpu.dot_dimension_numbers<[1], [0], [0], [1], [0, 0, 1, 1], [], []>} : vector<256x36xbf16>, vector<36x128xbf16>, vector<256x128xf32> -> vector<256x128xf32>
    %cst_5 = arith.constant dense<0.000000e+00> : vector<128xf32>
    %18 = vector.multi_reduction <add>, %17, %cst_5 [0] : vector<256x128xf32> to vector<128xf32>
    %19 = vector.shape_cast %18 : vector<128xf32> to vector<1x128xf32>
    %cst_6 = arith.constant 3.906250e-03 : f32
    %20 = vector.broadcast %cst_6 : f32 to vector<1x128xf32>
    %21 = arith.mulf %19, %20 : vector<1x128xf32>
    %22 = vector.broadcast %21 : vector<1x128xf32> to vector<256x128xf32>
    %23 = arith.subf %17, %22 : vector<256x128xf32>
    %24 = arith.mulf %23, %23 : vector<256x128xf32>
    %cst_7 = arith.constant dense<0.000000e+00> : vector<128xf32>
    %25 = vector.multi_reduction <add>, %24, %cst_7 [0] : vector<256x128xf32> to vector<128xf32>
    %26 = vector.shape_cast %25 : vector<128xf32> to vector<1x128xf32>
    %27 = vector.shape_cast %19 : vector<1x128xf32> to vector<1x1x128xf32>
    %c0_8 = arith.constant 0 : index
    %c0_9 = arith.constant 0 : index
    %c0_10 = arith.constant 0 : index
    %28 = vector.load %arg3[%c0_8, %c0_9, %c0_10] : memref<1x1x128xf32, #tpu.memory_space<vmem>>, vector<1x1x128xf32>
    tpu.vector_store %arg3[%c0_8, %c0_9, %c0_10], %27 {strides = array<i32>} : memref<1x1x128xf32, #tpu.memory_space<vmem>>, vector<1x1x128xf32>,
    %29 = vector.shape_cast %26 : vector<1x128xf32> to vector<1x1x128xf32>
    %c0_11 = arith.constant 0 : index
    %c0_12 = arith.constant 0 : index
    %c0_13 = arith.constant 0 : index
    %30 = vector.load %arg4[%c0_11, %c0_12, %c0_13] : memref<1x1x128xf32, #tpu.memory_space<vmem>>, vector<1x1x128xf32>
    tpu.vector_store %arg4[%c0_11, %c0_12, %c0_13], %29 {strides = array<i32>} : memref<1x1x128xf32, #tpu.memory_space<vmem>>, vector<1x1x128xf32>,
    return
  }
  func.func @transform_0(%arg0: i32) -> (i32, i32, i32, i32) {
    %c0_i32 = arith.constant 0 : i32
    %c0_i32_0 = arith.constant 0 : i32
    %c0_i32_1 = arith.constant 0 : i32
    %c0_i32_2 = arith.constant 0 : i32
    return %arg0, %c0_i32, %c0_i32_0, %c0_i32_1 : i32, i32, i32, i32
  }
  func.func @transform_1(%arg0: i32) -> (i32, i32) {
    %c0_i32 = arith.constant 0 : i32
    %c0_i32_0 = arith.constant 0 : i32
    %c0_i32_1 = arith.constant 0 : i32
    return %c0_i32, %c0_i32_0 : i32, i32
  }
  func.func @transform_2(%arg0: i32) -> (i32, i32, i32) {
    %c0_i32 = arith.constant 0 : i32
    %c0_i32_0 = arith.constant 0 : i32
    %c0_i32_1 = arith.constant 0 : i32
    return %arg0, %c0_i32, %c0_i32_0 : i32, i32, i32
  }
  func.func @transform_3(%arg0: i32) -> (i32, i32, i32) {
    %c0_i32 = arith.constant 0 : i32
    %c0_i32_0 = arith.constant 0 : i32
    %c0_i32_1 = arith.constant 0 : i32
    return %arg0, %c0_i32, %c0_i32_0 : i32, i32, i32
  }
}

module attributes {stable_mosaic.version = 11 : i64} {
  func.func @_conv3x3_bn_relu_kernel(%arg0: i32, %arg1: memref<1x18x18x4xbf16, #tpu.memory_space<vmem>>, %arg2: memref<36x128xbf16, #tpu.memory_space<vmem>>, %arg3: memref<1x128xf32, #tpu.memory_space<vmem>>, %arg4: memref<1x128xf32, #tpu.memory_space<vmem>>, %arg5: memref<16x16x128xf32, #tpu.memory_space<vmem>>) attributes {dimension_semantics = [#tpu.dimension_semantics<parallel>], iteration_bounds = array<i64: 2>, scalar_prefetch = 0 : i64, scratch_operands = 0 : i64, tpu.core_type = #tpu.core_type<tc>, window_params = [{transform_indices = @transform_0, window_bounds = array<i64: 1, 18, 18, 4>}, {pipeline_mode = #tpu.pipeline_mode<synchronous>, transform_indices = @transform_1, window_bounds = array<i64: 36, 128>}, {pipeline_mode = #tpu.pipeline_mode<synchronous>, transform_indices = @transform_2, window_bounds = array<i64: 1, 128>}, {pipeline_mode = #tpu.pipeline_mode<synchronous>, transform_indices = @transform_3, window_bounds = array<i64: 1, 128>}, {transform_indices = @transform_4, window_bounds = array<i64: 16, 16, 128>}]} {
    %c0 = arith.constant 0 : index
    %c0_0 = arith.constant 0 : index
    %c0_1 = arith.constant 0 : index
    %c0_2 = arith.constant 0 : index
    %0 = vector.load %arg1[%c0, %c0_0, %c0_1, %c0_2] : memref<1x18x18x4xbf16, #tpu.memory_space<vmem>>, vector<1x18x18x4xbf16>
    %1 = vector.shape_cast %0 : vector<1x18x18x4xbf16> to vector<18x18x4xbf16>
    %2 = vector.extract_strided_slice %1 {offsets = [0, 0, 0], sizes = [16, 18, 4], strides = [1, 1, 1]} : vector<18x18x4xbf16> to vector<16x18x4xbf16>
    %3 = vector.extract_strided_slice %2 {offsets = [0, 0, 0], sizes = [16, 16, 4], strides = [1, 1, 1]} : vector<16x18x4xbf16> to vector<16x16x4xbf16>
    %4 = vector.extract_strided_slice %2 {offsets = [0, 1, 0], sizes = [16, 16, 4], strides = [1, 1, 1]} : vector<16x18x4xbf16> to vector<16x16x4xbf16>
    %5 = vector.extract_strided_slice %2 {offsets = [0, 2, 0], sizes = [16, 16, 4], strides = [1, 1, 1]} : vector<16x18x4xbf16> to vector<16x16x4xbf16>
    %6 = vector.extract_strided_slice %1 {offsets = [1, 0, 0], sizes = [16, 18, 4], strides = [1, 1, 1]} : vector<18x18x4xbf16> to vector<16x18x4xbf16>
    %7 = vector.extract_strided_slice %6 {offsets = [0, 0, 0], sizes = [16, 16, 4], strides = [1, 1, 1]} : vector<16x18x4xbf16> to vector<16x16x4xbf16>
    %8 = vector.extract_strided_slice %6 {offsets = [0, 1, 0], sizes = [16, 16, 4], strides = [1, 1, 1]} : vector<16x18x4xbf16> to vector<16x16x4xbf16>
    %9 = vector.extract_strided_slice %6 {offsets = [0, 2, 0], sizes = [16, 16, 4], strides = [1, 1, 1]} : vector<16x18x4xbf16> to vector<16x16x4xbf16>
    %10 = vector.extract_strided_slice %1 {offsets = [2, 0, 0], sizes = [16, 18, 4], strides = [1, 1, 1]} : vector<18x18x4xbf16> to vector<16x18x4xbf16>
    %11 = vector.extract_strided_slice %10 {offsets = [0, 0, 0], sizes = [16, 16, 4], strides = [1, 1, 1]} : vector<16x18x4xbf16> to vector<16x16x4xbf16>
    %12 = vector.extract_strided_slice %10 {offsets = [0, 1, 0], sizes = [16, 16, 4], strides = [1, 1, 1]} : vector<16x18x4xbf16> to vector<16x16x4xbf16>
    %13 = vector.extract_strided_slice %10 {offsets = [0, 2, 0], sizes = [16, 16, 4], strides = [1, 1, 1]} : vector<16x18x4xbf16> to vector<16x16x4xbf16>
    %14 = tpu.concatenate %3, %4, %5, %7, %8, %9, %11, %12, %13 in 2 : vector<16x16x4xbf16>, vector<16x16x4xbf16>, vector<16x16x4xbf16>, vector<16x16x4xbf16>, vector<16x16x4xbf16>, vector<16x16x4xbf16>, vector<16x16x4xbf16>, vector<16x16x4xbf16>, vector<16x16x4xbf16> -> vector<16x16x36xbf16>
    %15 = vector.shape_cast %14 : vector<16x16x36xbf16> to vector<256x36xbf16>
    %c0_3 = arith.constant 0 : index
    %c0_4 = arith.constant 0 : index
    %16 = vector.load %arg2[%c0_3, %c0_4] : memref<36x128xbf16, #tpu.memory_space<vmem>>, vector<36x128xbf16>
    %cst = arith.constant dense<0.000000e+00> : vector<256x128xf32>
    %17 = tpu.matmul %15, %16, %cst {dimension_numbers = #tpu.dot_dimension_numbers<[1], [0], [0], [1], [0, 0, 1, 1], [], []>} : vector<256x36xbf16>, vector<36x128xbf16>, vector<256x128xf32> -> vector<256x128xf32>
    %c0_5 = arith.constant 0 : index
    %c0_6 = arith.constant 0 : index
    %18 = vector.load %arg3[%c0_5, %c0_6] : memref<1x128xf32, #tpu.memory_space<vmem>>, vector<1x128xf32>
    %19 = vector.broadcast %18 : vector<1x128xf32> to vector<256x128xf32>
    %20 = arith.mulf %17, %19 : vector<256x128xf32>
    %c0_7 = arith.constant 0 : index
    %c0_8 = arith.constant 0 : index
    %21 = vector.load %arg4[%c0_7, %c0_8] : memref<1x128xf32, #tpu.memory_space<vmem>>, vector<1x128xf32>
    %22 = vector.broadcast %21 : vector<1x128xf32> to vector<256x128xf32>
    %23 = arith.addf %20, %22 : vector<256x128xf32>
    %cst_9 = arith.constant 0.000000e+00 : f32
    %24 = vector.broadcast %cst_9 : f32 to vector<256x128xf32>
    %25 = arith.maximumf %23, %24 : vector<256x128xf32>
    %26 = vector.shape_cast %25 : vector<256x128xf32> to vector<16x16x128xf32>
    %c0_10 = arith.constant 0 : index
    %c0_11 = arith.constant 0 : index
    %c0_12 = arith.constant 0 : index
    %27 = vector.load %arg5[%c0_10, %c0_11, %c0_12] : memref<16x16x128xf32, #tpu.memory_space<vmem>>, vector<16x16x128xf32>
    tpu.vector_store %arg5[%c0_10, %c0_11, %c0_12], %26 {strides = array<i32>} : memref<16x16x128xf32, #tpu.memory_space<vmem>>, vector<16x16x128xf32>,
    return
  }
  func.func @transform_0(%arg0: i32) -> (i32, i32, i32, i32) {
    %c0_i32 = arith.constant 0 : i32
    %c0_i32_0 = arith.constant 0 : i32
    %c0_i32_1 = arith.constant 0 : i32
    %c0_i32_2 = arith.constant 0 : i32
    return %arg0, %c0_i32, %c0_i32_0, %c0_i32_1 : i32, i32, i32, i32
  }
  func.func @transform_1(%arg0: i32) -> (i32, i32) {
    %c0_i32 = arith.constant 0 : i32
    %c0_i32_0 = arith.constant 0 : i32
    %c0_i32_1 = arith.constant 0 : i32
    return %c0_i32, %c0_i32_0 : i32, i32
  }
  func.func @transform_2(%arg0: i32) -> (i32, i32) {
    %c0_i32 = arith.constant 0 : i32
    %c0_i32_0 = arith.constant 0 : i32
    %c0_i32_1 = arith.constant 0 : i32
    return %c0_i32, %c0_i32_0 : i32, i32
  }
  func.func @transform_3(%arg0: i32) -> (i32, i32) {
    %c0_i32 = arith.constant 0 : i32
    %c0_i32_0 = arith.constant 0 : i32
    %c0_i32_1 = arith.constant 0 : i32
    return %c0_i32, %c0_i32_0 : i32, i32
  }
  func.func @transform_4(%arg0: i32) -> (i32, i32, i32) {
    %c0_i32 = arith.constant 0 : i32
    %c0_i32_0 = arith.constant 0 : i32
    %c0_i32_1 = arith.constant 0 : i32
    return %arg0, %c0_i32, %c0_i32_0 : i32, i32, i32
  }
}

</mosaic_0001>

<bundles_post_ra>
// kernel: basic_conv_block.2
= control target key start
LH: loop header
LB: loop body
LE: loop exit
PB: predicated region body
PF: predicated region fallthrough
CT: control target
= control target key end

     0   :  { %s1713_s12 = smov 0   ;;  %s2574_s0 = inlined_call_operand.vmem [shape: bf16[2,18,18,4], index: 0, kind: input, shape index: {}]   ;;  %s2575_s1 = inlined_call_operand.vmem [shape: bf16[36,128], index: 1, kind: input, shape index: {}]   ;;  %s2576_s2 = inlined_call_operand.vmem [shape: f32[2,1,128], index: 2, kind: output, shape index: {0}]   ;;  %s2577_s3 = inlined_call_operand.vmem [shape: f32[2,1,128], index: 3, kind: output, shape index: {1}]  }
   0x1 LB: > { %s1526_s13 = sadd.s32 4294967295, %s1683_s12   ;;  %p1530_p0 = scmp.ge.s32.totalorder %s1683_s12, 1  ;;  %s1683_s12 = sphi %s1713_s12, %s14_s12  }
   0x2   : > { %p140_p1 = scmp.lt.s32.totalorder %s1683_s12, 3 }
   0x4   : > { %p141_p2 = pnand %p1530_p0, %p140_p1 }
   0x5   : > { %p165_p3 = scmp.lt.s32.totalorder (!%p141_p2), %s1526_s13, 1  ;;  %s1685_s18 = smov (!%p141_p2), 12  }
   0x6   : > { %144 = sbr.rel (%p141_p2) target bundleno = 712 (0x2c8), region = 28  ;;  %s1686_s19 = smov (!%p141_p2), 4  }
   0x7   : > { %s1687_s20 = smov (!%p141_p2), 8   ;;  %s1688_s21 = smov (!%p141_p2), 20  }
   0x8   : > { %s1689_s22 = smov (!%p141_p2), 16   ;;  %s1690_s23 = smov (!%p141_p2), 24  }
   0x9   : > { %s1691_s24 = smov (!%p141_p2), 28   ;;  %s1692_s25 = smov (!%p141_p2), 32  }
   0xb   : > { %s2579_s13 = smov (!%p165_p3, %s1526_s13), 1  ;;  %vm359_vm0 = vsmask.f32 7424  ;;  %vm584_vm1 = vcmask 1046528   ;;  %vm1220_vm2 = vcmask 1041408   ;;  %vm903_vm3 = vcmask 31744  }
   0xc   : > { %s1659_s14 = smul.u32 216, %s2579_s13  ;;  %vm936_vm4 = vcmask 64512   ;;  %vm969_vm5 = vcmask 97280   ;;  %vm1002_vm6 = vcmask 130048   ;;  %vm1035_vm7 = vcmask 162816   ;;  %s172_s7 = scalar_lea.vmem %s2576_s2, %s2579_s13 }
   0xd   : > { %vm1068_vm8 = vcmask 195584   ;;  %vm1101_vm9 = vcmask 228352   ;;  %vm1134_vm10 = vcmask 261120   ;;  %vm1187_vm11 = vcmask 293888   ;;  %s175_s10 = scalar_lea.vmem %s2577_s3, %s2579_s13 }
   0xe   : > { %s1727_s17 = scalar_lea.vmem %s2574_s0, %s1659_s14 }
   0xf   : > { %v1730_v0 = vld [vmem:[%s1727_s17 + $0xc] sm:$0xff]  ;;  %v1733_v1 = vld [vmem:[%s1727_s17 + $0x18] sm:$0xff]  ;;  %v185_v2 = vld [vmem:[%s1727_s17 + $0x20] sm:$0x1] }
  0x10   : > { %v329_v3 = vunpack.c.l.b16 %v185_v2  ;;  %v1737_v4 = vld [vmem:[%s1727_s17] sm:$0xff]  ;;  %v179_v5 = vld [vmem:[%s1727_s17 + $0x8] sm:$0x1]  ;;  %670 = vrot.lane.b32.xlu0 %v1730_v0, %s1685_s18  ;;  %v385_v7 = vshrl.u32 %v1733_v1, 16  ;;  %v387_v8 = vshll.u32 %v1733_v1, 16  ;;  %v373_v32 = vshrl.u32 %v1730_v0, 16 }
  0x11   : > { %v1741_v6 = vld [vmem:[%s1727_s17 + $0x24] sm:$0xff]  ;;  %v327_v9 = vunpack.c.l.b16 %v179_v5  ;;  %v188_v10 = vld [vmem:[%s1727_s17 + $0x2c] sm:$0x1]  ;;  %v182_v11 = vld [vmem:[%s1727_s17 + $0x14] sm:$0x1]  ;;  %v361_v13 = vshrl.u32 %v1737_v4, 16 }
  0x12   : > { %v1749_v12 = vpack.c.b16 %v329_v3, %v329_v3  ;;  %v363_v14 = vshll.u32 %v1737_v4, 16  ;;  %v330_v15 = vunpack.c.l.b16 %v188_v10  ;;  %v389_v16 = vrot.slane %v387_v8, 1  ;;  %v191_v35 = vld [vmem:[%s1727_s17 + $0x38] sm:$0x1]  ;;  %v1767_v39 = vld [vmem:[%s1727_s17 + $0x30] sm:$0xff]  ;;  %v1806_v8 = vld [vmem:[%s1727_s17 + $0x3c] sm:$0xff] }
  0x13   : > { %v343_v17 = vpack.c.b16 %v327_v9, %v327_v9  ;;  %v399_v18 = vshll.u32 %v1741_v6, 16  ;;  %v328_v22 = vunpack.c.l.b16 %v182_v11  ;;  %v397_v25 = vshrl.u32 %v1741_v6, 16  ;;  %v194_v63 = vld [vmem:[%s1727_s17 + $0x44] sm:$0x1] }
  0x14   : > { %v392_v19 = vshll.u32 %v1749_v12, 16  ;;  %v365_v20 = vrot.slane %v363_v14, 1  ;;  %v1755_v21 = vpack.c.b16 %v330_v15, %v330_v15  ;;  %v390_v23 = vor.u32 %v389_v16, %v385_v7 }
  0x15   : > { %v368_v24 = vshll.u32 %v343_v17, 16  ;;  %v401_v26 = vrot.slane %v399_v18, 1  ;;  %v344_v30 = vpack.c.b16 %v328_v22, %v328_v22  ;;  %v375_v33 = vshll.u32 %v1730_v0, 16 }
  0x16   : > { %v394_v27 = vrot.slane %v392_v19, 1  ;;  %v366_v28 = vor.u32 %v365_v20, %v361_v13  ;;  %v404_v29 = vshll.u32 %v1755_v21, 16  ;;  %v585_v34 = vrot.slane %v1737_v4, 1 }
  0x17   : > { %v370_v31 = vrot.slane %v368_v24, 1  ;;  %v380_v37 = vshll.u32 %v344_v30, 16  ;;  %v586_v38 = vrot.slane %v343_v17, 1  ;;  %v377_v41 = vrot.slane %v375_v33, 1  ;;  %v197_v17 = vld [vmem:[%s1727_s17 + $0x50] sm:$0x1] }
  0x18   : > { %v1764_v36 = vsel %vm359_vm0, %v390_v23, %v394_v27  ;;  %v402_v42 = vor.u32 %v401_v26, %v397_v25  ;;  %v406_v43 = vrot.slane %v404_v29, 1  ;;  %v331_v45 = vunpack.c.l.b16 %v191_v35  ;;  %v1831_v23 = vld [vmem:[%s1727_s17 + $0x48] sm:$0xff] }
  0x19   : > { %556 = vrot.lane.b32.xlu1 %v1764_v36, %s1686_s19  ;;  %v371_v40 = vsel %vm359_vm0, %v366_v28, %v370_v31  ;;  %v587_v44 = vsel %vm584_vm1, %v585_v34, %v586_v38  ;;  %v378_v46 = vor.u32 %v377_v41, %v373_v32  ;;  %v382_v47 = vrot.slane %v380_v37, 1  ;;  %v203_v27 = vld [vmem:[%s1727_s17 + $0x68] sm:$0x1]  ;;  %v1846_v31 = vld [vmem:[%s1727_s17 + $0x60] sm:$0xff]  ;;  %v206_v41 = vld [vmem:[%s1727_s17 + $0x74] sm:$0x1] }
  0x1a   : > { %552 = vrot.lane.b32.xlu0 %v371_v40, %s1686_s19  ;;  %633 = vrot.lane.b32.xlu2 %v587_v44, %s1687_s20  ;;  %v588_v48 = vrot.slane %v1730_v0, 1  ;;  %v589_v49 = vrot.slane %v344_v30, 1  ;;  %v347_v50 = vpack.c.b16 %v331_v45, %v331_v45  ;;  %v411_v51 = vshll.u32 %v1767_v39, 16 }
  0x1b   : > { %v1778_v52 = vsel %vm359_vm0, %v402_v42, %v406_v43  ;;  %v383_v53 = vsel %vm359_vm0, %v378_v46, %v382_v47  ;;  %v409_v55 = vshrl.u32 %v1767_v39, 16  ;;  %v591_v61 = vrot.slane %v1733_v1, 1  ;;  %v1867_v47 = vld [vmem:[%s1727_s17 + $0x6c] sm:$0xff] }
  0x1c   : > { %v590_v54 = vsel %vm584_vm1, %v588_v48, %v589_v49  ;;  %v413_v56 = vrot.slane %v411_v51, 1  ;;  %v416_v57 = vshll.u32 %v347_v50, 16  ;;  %v592_v62 = vrot.slane %v1749_v12, 1 }
  0x1d   : > { %v332_v3 = vunpack.c.l.b16 %v194_v63  ;;  %v597_v5 = vrot.slane %v1767_v39, 1  ;;  %v598_v7 = vrot.slane %v347_v50, 1  ;;  %v423_v10 = vshll.u32 %v1806_v8, 16 }
  0x1e   : > { %v414_v58 = vor.u32 %v413_v56, %v409_v55  ;;  %v418_v59 = vrot.slane %v416_v57, 1  ;;  %v1799_v2 = vsel %vm584_vm1, %v591_v61, %v592_v62  ;;  %v421_v12 = vshrl.u32 %v1806_v8, 16 }
  0x1f   : > { %v348_v9 = vpack.c.b16 %v332_v3, %v332_v3  ;;  %v1812_v11 = vsel %vm584_vm1, %v597_v5, %v598_v7  ;;  %v425_v13 = vrot.slane %v423_v10, 1  ;;  %v333_v19 = vunpack.c.l.b16 %v197_v17 }
  0x20   : > { %v1788_v60 = vsel %vm359_vm0, %v414_v58, %v418_v59  ;;  %v600_v20 = vrot.slane %v1806_v8, 1  ;;  %v435_v25 = vshll.u32 %v1831_v23, 16  ;;  %v433_v28 = vshrl.u32 %v1831_v23, 16  ;;  %v1881_v59 = vld [vmem:[%s1727_s17 + $0x78] sm:$0xff] }
  0x21   : > { %558 = vrot.lane.b32.xlu1 %v1778_v52, %s1686_s19  ;;  %v428_v14 = vshll.u32 %v348_v9, 16  ;;  %v426_v15 = vor.u32 %v425_v13, %v421_v12  ;;  %v601_v22 = vrot.slane %v348_v9, 1  ;;  %v349_v24 = vpack.c.b16 %v333_v19, %v333_v19 }
  0x22   : > { %554 = vrot.lane.b32.xlu0 %v383_v53, %s1686_s19  ;;  %752 = vrot.lane.b32.xlu2 %v590_v54, %s1688_s21  ;;  %v437_v29 = vrot.slane %v435_v25, 1  ;;  %v335_v32 = vunpack.c.l.b16 %v203_v27  ;;  %v594_v33 = vrot.slane %v1741_v6, 1  ;;  %v595_v34 = vrot.slane %v1755_v21, 1 }
  0x23   : > { %v430_v16 = vrot.slane %v428_v14, 1  ;;  %v1837_v26 = vsel %vm584_vm1, %v600_v20, %v601_v22  ;;  %v440_v30 = vshll.u32 %v349_v24, 16  ;;  %v459_v37 = vshll.u32 %v1846_v31, 16 }
  0x24   : > { %v438_v35 = vor.u32 %v437_v29, %v433_v28  ;;  %v351_v38 = vpack.c.b16 %v335_v32, %v335_v32  ;;  %v1854_v40 = vsel %vm584_vm1, %v594_v33, %v595_v34  ;;  %v457_v43 = vshrl.u32 %v1846_v31, 16  ;;  %v1171_v32 = vld [vmem:[%s2575_s1 + $0x10] sm:$0x3] }
  0x25   : > { %v1823_v18 = vsel %vm359_vm0, %v426_v15, %v430_v16  ;;  %v461_v21 = vrot.slane %v459_v37, 1  ;;  %v603_v45 = vrot.slane %v1831_v23, 1  ;;  %v604_v46 = vrot.slane %v349_v24, 1  ;;  %v1942_v37 = vld [vmem:[%s1727_s17 + $0x54] sm:$0xff] }
  0x26   : > { %v464_v44 = vshll.u32 %v351_v38, 16  ;;  %v336_v48 = vunpack.c.l.b16 %v206_v41  ;;  %v609_v49 = vrot.slane %v1846_v31, 1  ;;  %v610_v50 = vrot.slane %v351_v38, 1 }
  0x27   : > { %v462_v51 = vor.u32 %v461_v21, %v457_v43  ;;  %v471_v55 = vshll.u32 %v1867_v47, 16  ;;  %v1875_v56 = vsel %vm584_vm1, %v603_v45, %v604_v46  ;;  %v469_v63 = vshrl.u32 %v1867_v47, 16  ;;  %v1648_v43 = vld [vmem:[%s2575_s1] sm:$0xff]  ;;  %v215_v45 = vld [vmem:[%s1727_s17 + $0x98] sm:$0x1] }
  0x28   : > { %v352_v57 = vpack.c.b16 %v336_v48, %v336_v48  ;;  %v1878_v58 = vsel %vm584_vm1, %v609_v49, %v610_v50  ;;  %v612_v7 = vrot.slane %v1867_v47, 1  ;;  %v483_v12 = vshll.u32 %v1881_v59, 16  ;;  %v1962_v50 = vld [vmem:[%s1727_s17 + $0x90] sm:$0xff] }
  0x29   : > { %717 = vrot.lane.b32.xlu1 %v383_v53, %s1689_s22  ;;  %v466_v53 = vrot.slane %v464_v44, 1  ;;  %v473_v3 = vrot.slane %v471_v55, 1  ;;  %v481_v16 = vshrl.u32 %v1881_v59, 16  ;;  %v615_v27 = vrot.slane %v1881_v59, 1 }
  0x2a   : > { %789 = vrot.lane.b32.xlu0 %v1733_v1, %s1690_s23  ;;  %560 = vrot.lane.b32.xlu2 %v1788_v60, %s1686_s19  ;;  %v476_v5 = vshll.u32 %v352_v57, 16  ;;  %v613_v9 = vrot.slane %v352_v57, 1  ;;  %v485_v17 = vrot.slane %v483_v12, 1  ;;  %v1181_v33 = vunpack.c.l.b16 %v1171_v32 }
  0x2b   : > { %v1884_v62 = vsel %vm359_vm0, %v462_v51, %v466_v53  ;;  %v474_v13 = vor.u32 %v473_v3, %v469_v63  ;;  %v447_v41 = vshll.u32 %v1942_v37, 16  ;;  %v445_v46 = vshrl.u32 %v1942_v37, 16 }
  0x2c   : > { %v478_v14 = vrot.slane %v476_v5, 1  ;;  %v1896_v15 = vsel %vm584_vm1, %v612_v7, %v613_v9  ;;  %v486_v22 = vor.u32 %v485_v17, %v481_v16  ;;  %v1184_v34 = vpack.c.b16 %v1181_v33, %v1181_v33 }
  0x2d   : > { %v449_v48 = vrot.slane %v447_v41, 1  ;;  %v339_v51 = vunpack.c.l.b16 %v215_v45  ;;  %v606_v57 = vrot.slane %v1942_v37, 1  ;;  %v507_v5 = vshll.u32 %v1962_v50, 16 }
  0x2e   : > { %v1900_v20 = vsel %vm359_vm0, %v474_v13, %v478_v14  ;;  %v505_v12 = vshrl.u32 %v1962_v50, 16 }
  0x2f   : > { %v450_v53 = vor.u32 %v449_v48, %v445_v46  ;;  %v355_v3 = vpack.c.b16 %v339_v51, %v339_v51  ;;  %v509_v13 = vrot.slane %v507_v5, 1 }
  0x31   : > { %836 = vrot.lane.b32.xlu1 %v1764_v36, %s1691_s24  ;;  %v512_v14 = vshll.u32 %v355_v3, 16 }
  0x32   : > { %635 = vrot.lane.b32.xlu0 %v590_v54, %s1687_s20  ;;  %871 = vrot.lane.b32.xlu2 %v1799_v2, %s1692_s25  ;;  %v209_v54 = vld [vmem:[%s1727_s17 + $0x80] sm:$0x1] }
  0x33   : > { %v337_v61 = vunpack.c.l.b16 %v209_v54 }
  0x35   : > { %v353_v10 = vpack.c.b16 %v337_v61, %v337_v61 }
  0x37   : > { %v488_v19 = vshll.u32 %v353_v10, 16  ;;  %v616_v28 = vrot.slane %v353_v10, 1 }
  0x39   : > { %641 = vrot.lane.b32.xlu1 %v1812_v11, %s1687_s20  ;;  %v490_v24 = vrot.slane %v488_v19, 1  ;;  %v1919_v29 = vsel %vm584_vm1, %v615_v27, %v616_v28  ;;  %v510_v19 = vor.u32 %v509_v13, %v505_v12  ;;  %v218_v27 = vld [vmem:[%s1727_s17 + $0xa4] sm:$0x1]  ;;  %v212_v13 = vld [vmem:[%s1727_s17 + $0x8c] sm:$0x1] }
  0x3a   : > { %678 = vrot.lane.b32.xlu0 %v1806_v8, %s1685_s18  ;;  %672 = vrot.lane.b32.xlu2 %v1733_v1, %s1685_s18  ;;  %v340_v33 = vunpack.c.l.b16 %v218_v27  ;;  %v2041_v27 = vld [vmem:[%s1727_s17 + $0x84] sm:$0xff] }
  0x3b   : > { %v1909_v25 = vsel %vm359_vm0, %v486_v22, %v490_v24  ;;  %v514_v22 = vrot.slane %v512_v14, 1  ;;  %v2035_v14 = vld [vmem:[%s1727_s17 + $0xa8] sm:$0xff] }
  0x3d   : > { %v1997_v32 = vsel %vm359_vm0, %v510_v19, %v514_v22 }
  0x41   : > { %719 = vrot.lane.b32.xlu1 %v1764_v36, %s1689_s22  ;;  %v442_v36 = vrot.slane %v440_v30, 1 }
  0x42   : > { %754 = vrot.lane.b32.xlu0 %v1799_v2, %s1688_s21  ;;  %725 = vrot.lane.b32.xlu2 %v1823_v18, %s1689_s22 }
  0x43   : > { %v1858_v42 = vsel %vm359_vm0, %v438_v35, %v442_v36  ;;  %v1222_v35 = vsel %vm1220_vm2, %v1184_v34, 0 }
  0x44   : > { %1229 = vmatpush.bf16.msra.mxu0 %v1222_v35  ;;  %1650 = vmatpush.bf16.msra.mxu1 %v1222_v35 }
  0x45   : > { %1651 = vmatpush.bf16.msra.mxu2 %v1222_v35  ;;  %1652 = vmatpush.bf16.msra.mxu3 %v1222_v35  ;;  %v622_v35 = vrot.slane %v355_v3, 1  ;;  %v221_v3 = vld [vmem:[%s1727_s17 + $0xb0] sm:$0x1] }
  0x46   : > { %v341_v19 = vunpack.c.l.b16 %v221_v3 }
  0x49   : > { %760 = vrot.lane.b32.xlu1 %v1837_v26, %s1688_s21 }
  0x4a   : > { %797 = vrot.lane.b32.xlu0 %v1831_v23, %s1690_s23  ;;  %791 = vrot.lane.b32.xlu2 %v1741_v6, %s1690_s23 }
  0x51   : > { %838 = vrot.lane.b32.xlu1 %v1778_v52, %s1691_s24 }
  0x52   : > { %873 = vrot.lane.b32.xlu0 %v1854_v40, %s1692_s25  ;;  %844 = vrot.lane.b32.xlu2 %v1858_v42, %s1691_s24 }
  0x59   : > { %879 = vrot.lane.b32.xlu1 %v1875_v56, %s1692_s25 }
  0x5a   : > { %649 = vrot.lane.b32.xlu0 %v1878_v58, %s1687_s20  ;;  %568 = vrot.lane.b32.xlu2 %v1884_v62, %s1686_s19 }
  0x61   : > { %686 = vrot.lane.b32.xlu1 %v1867_v47, %s1685_s18 }
  0x62   : > { %768 = vrot.lane.b32.xlu0 %v1896_v15, %s1688_s21  ;;  %733 = vrot.lane.b32.xlu2 %v1900_v20, %s1689_s22 }
  0x69   : > { %805 = vrot.lane.b32.xlu1 %v1881_v59, %s1690_s23 }
  0x6a   : > { %852 = vrot.lane.b32.xlu0 %v1909_v25, %s1691_s24  ;;  %562 = vrot.lane.b32.xlu2 %v1823_v18, %s1686_s19 }
  0x71   : > { %637 = vrot.lane.b32.xlu1 %v1799_v2, %s1687_s20  ;;  %v200_v2 = vld [vmem:[%s1727_s17 + $0x5c] sm:$0x1] }
  0x72   : > { %887 = vrot.lane.b32.xlu0 %v1919_v29, %s1692_s25  ;;  %643 = vrot.lane.b32.xlu2 %v1837_v26, %s1687_s20  ;;  %v334_v38 = vunpack.c.l.b16 %v200_v2  ;;  %v621_v2 = vrot.slane %v1962_v50, 1 }
  0x74   : > { %v1927_v30 = vpop.permute.xlu2 %633  ;;  %v2017_v46 = vsel %vm584_vm1, %v621_v2, %v622_v35  ;;  %v357_v2 = vpack.c.b16 %v341_v19, %v341_v19  ;;  %v531_v35 = vshll.u32 %v2035_v14, 16 }
  0x79   : > { %674 = vrot.lane.b32.xlu1 %v1741_v6, %s1685_s18  ;;  %v1649_v6 = vld [vmem:[%s2575_s1 + $0x8] sm:$0xff] }
  0x7a   : > { %721 = vrot.lane.b32.xlu0 %v1778_v52, %s1689_s22  ;;  %680 = vrot.lane.b32.xlu2 %v1831_v23, %s1685_s18  ;;  %v350_v52 = vpack.c.b16 %v334_v38, %v334_v38  ;;  %v2007_v38 = vld [vmem:[%s1727_s17 + $0x9c] sm:$0xff] }
  0x7b   : > { %1230 = vmatpush.bf16.msra.mxu0 %v1649_v6  ;;  %1653 = vmatpush.bf16.msra.mxu1 %v1649_v6  ;;  %v519_v41 = vshll.u32 %v2007_v38, 16 }
  0x7c   : > { %v1939_v36 = vpop.permute.xlu2 %752  ;;  %1654 = vmatpush.bf16.msra.mxu2 %v1649_v6  ;;  %1655 = vmatpush.bf16.msra.mxu3 %v1649_v6  ;;  %v452_v49 = vshll.u32 %v350_v52, 16  ;;  %v607_v61 = vrot.slane %v350_v52, 1  ;;  %v356_v52 = vpack.c.b16 %v340_v33, %v340_v33 }
  0x7e   : > { %v454_v54 = vrot.slane %v452_v49, 1  ;;  %v1978_v10 = vsel %vm584_vm1, %v606_v57, %v607_v61  ;;  %v517_v49 = vshrl.u32 %v2007_v38, 16  ;;  %v524_v51 = vshll.u32 %v356_v52, 16 }
  0x7f   : > { %1231 = vmatpush.bf16.msra.mxu0 %v1648_v43  ;;  %1656 = vmatpush.bf16.msra.mxu1 %v1648_v43  ;;  %v625_v33 = vrot.slane %v356_v52, 1  ;;  %v493_v52 = vshrl.u32 %v2041_v27, 16 }
  0x80   : > { %1657 = vmatpush.bf16.msra.mxu2 %v1648_v43  ;;  %1658 = vmatpush.bf16.msra.mxu3 %v1648_v43  ;;  %v1975_v9 = vsel %vm359_vm0, %v450_v53, %v454_v54 }
  0x81   : > { %727 = vrot.lane.b32.xlu1 %v1858_v42, %s1689_s22 }
  0x82   : > { %762 = vrot.lane.b32.xlu0 %v1875_v56, %s1688_s21  ;;  %v671_v21 = vpop.permute.xlu0 %670  ;;  %756 = vrot.lane.b32.xlu2 %v1854_v40, %s1688_s21 }
  0x84   : > { %v1957_v44 = vpop.permute.xlu2 %560 }
  0x89   : > { %793 = vrot.lane.b32.xlu1 %v1767_v39, %s1690_s23 }
  0x8a   : > { %840 = vrot.lane.b32.xlu0 %v1788_v60, %s1691_s24  ;;  %799 = vrot.lane.b32.xlu2 %v1942_v37, %s1690_s23 }
  0x8b   : > { %v1968_v55 = vpop.permute.xlu1 %556 }
  0x8c   : > { %v553_v63 = vpop.permute.xlu0 %552  ;;  %v872_v7 = vpop.permute.xlu2 %871 }
  0x8d   : > { %v905_v28 = vsel %vm903_vm3, %v1737_v4, %v553_v63  ;;  %v526_v63 = vrot.slane %v524_v51, 1 }
  0x8e   : > { %v938_v34 = vsel %vm936_vm4, %v905_v28, %v1927_v30  ;;  %v338_v28 = vunpack.c.l.b16 %v212_v13 }
  0x8f   : > { %v971_v6 = vsel %vm969_vm5, %v938_v34, %v671_v21  ;;  %v521_v21 = vrot.slane %v519_v41, 1 }
  0x91   : > { %846 = vrot.lane.b32.xlu1 %v1975_v9, %s1691_s24  ;;  %v522_v61 = vor.u32 %v521_v21, %v517_v49  ;;  %v533_v49 = vrot.slane %v531_v35, 1  ;;  %v536_v21 = vshll.u32 %v357_v2, 16 }
  0x92   : > { %881 = vrot.lane.b32.xlu0 %v1978_v10, %s1692_s25  ;;  %875 = vrot.lane.b32.xlu2 %v1812_v11, %s1692_s25 }
  0x93   : > { %v1985_v16 = vpop.permute.xlu1 %558  ;;  %v2038_v22 = vsel %vm359_vm0, %v522_v61, %v526_v63  ;;  %v538_v61 = vrot.slane %v536_v21, 1 }
  0x94   : > { %v1989_v17 = vpop.permute.xlu0 %554  ;;  %v1991_v24 = vpop.permute.xlu2 %672 }
  0x99   : > { %570 = vrot.lane.b32.xlu1 %v1900_v20, %s1686_s19 }
  0x9a   : > { %651 = vrot.lane.b32.xlu0 %v1896_v15, %s1687_s20  ;;  %576 = vrot.lane.b32.xlu2 %v1997_v32, %s1686_s19 }
  0x9b   : > { %v718_v4 = vpop.permute.xlu1 %717 }
  0x9c   : > { %v790_v30 = vpop.permute.xlu0 %789  ;;  %v1004_v43 = vsel %vm1002_vm6, %v971_v6, %v718_v4  ;;  %v2014_v45 = vpop.permute.xlu2 %725  ;;  %v354_v6 = vpack.c.b16 %v338_v28, %v338_v28  ;;  %v907_v28 = vsel %vm903_vm3, %v1730_v0, %v1989_v17 }
  0x9d   : > { %v1037_v48 = vsel %vm1035_vm7, %v1004_v43, %v1939_v36 }
  0x9e   : > { %v1070_v53 = vsel %vm1068_vm8, %v1037_v48, %v790_v30  ;;  %v495_v30 = vshll.u32 %v2041_v27, 16  ;;  %v529_v48 = vshrl.u32 %v2035_v14, 16 }
  0xa0   : > { %v497_v51 = vrot.slane %v495_v30, 1  ;;  %v618_v30 = vrot.slane %v2041_v27, 1 }
  0xa1   : > { %657 = vrot.lane.b32.xlu1 %v2017_v46, %s1687_s20 }
  0xa2   : > { %694 = vrot.lane.b32.xlu0 %v2007_v38, %s1685_s18  ;;  %688 = vrot.lane.b32.xlu2 %v1881_v59, %s1685_s18  ;;  %v498_v3 = vor.u32 %v497_v51, %v493_v52 }
  0xa3   : > { %v837_v54 = vpop.permute.xlu1 %836 }
  0xa4   : > { %v1103_v36 = vsel %vm1101_vm9, %v1070_v53, %v837_v54  ;;  %v636_v57 = vpop.permute.xlu0 %635  ;;  %v792_v12 = vpop.permute.xlu2 %791  ;;  %v500_v53 = vshll.u32 %v354_v6, 16 }
  0xa5   : > { %v1136_v5 = vsel %vm1134_vm10, %v1103_v36, %v872_v7  ;;  %v624_v7 = vrot.slane %v2007_v38, 1  ;;  %v534_v36 = vor.u32 %v533_v49, %v529_v48  ;;  %v619_v48 = vrot.slane %v354_v6, 1 }
  0xa6   : > { %1612 = vmatmul.msk.bf16.vlgmr.msra.gmra.mxu0 %vm1187_vm11, %v1136_v5  ;;  %v502_v5 = vrot.slane %v500_v53, 1 }
  0xa7   : > { %v2053_v43 = vsel %vm584_vm1, %v624_v7, %v625_v33  ;;  %v2064_v19 = vsel %vm359_vm0, %v534_v36, %v538_v61  ;;  %v940_v33 = vsel %vm936_vm4, %v907_v28, %v636_v57  ;;  %v913_v57 = vsel %vm903_vm3, %v1767_v39, %v1957_v44 }
  0xa8   : > { %v2070_v7 = vsel %vm359_vm0, %v498_v3, %v502_v5  ;;  %v973_v0 = vsel %vm969_vm5, %v940_v33, %v1991_v24  ;;  %v2088_v52 = vsel %vm584_vm1, %v618_v30, %v619_v48  ;;  %v627_v44 = vrot.slane %v2035_v14, 1 }
  0xa9   : > { %735 = vrot.lane.b32.xlu1 %v1909_v25, %s1689_s22  ;;  %v628_v24 = vrot.slane %v357_v2, 1 }
  0xaa   : > { %770 = vrot.lane.b32.xlu0 %v1919_v29, %s1688_s21  ;;  %741 = vrot.lane.b32.xlu2 %v2038_v22, %s1689_s22 }
  0xab   : > { %v642_v34 = vpop.permute.xlu1 %641  ;;  %v2107_v2 = vsel %vm584_vm1, %v627_v44, %v628_v24  ;;  %v909_v24 = vsel %vm903_vm3, %v1733_v1, %v1968_v55 }
  0xac   : > { %v679_v4 = vpop.permute.xlu0 %678  ;;  %v845_v41 = vpop.permute.xlu2 %844  ;;  %v946_v21 = vsel %vm936_vm4, %v913_v57, %v642_v34 }
  0xad   : > { %v979_v51 = vsel %vm969_vm5, %v946_v21, %v679_v4 }
  0xae   : > { %v1012_v34 = vsel %vm1002_vm6, %v979_v51, %v2014_v45 }
  0xb1   : > { %776 = vrot.lane.b32.xlu1 %v2053_v43, %s1688_s21 }
  0xb2   : > { %813 = vrot.lane.b32.xlu0 %v2035_v14, %s1690_s23  ;;  %807 = vrot.lane.b32.xlu2 %v2041_v27, %s1690_s23 }
  0xb3   : > { %v720_v54 = vpop.permute.xlu1 %719 }
  0xb4   : > { %v755_v63 = vpop.permute.xlu0 %754  ;;  %v569_v13 = vpop.permute.xlu2 %568 }
  0xb9   : > { %564 = vrot.lane.b32.xlu1 %v1858_v42, %s1686_s19  ;;  %v1006_v42 = vsel %vm1002_vm6, %v973_v0, %v720_v54 }
  0xba   : > { %860 = vrot.lane.b32.xlu0 %v2064_v19, %s1691_s24  ;;  %854 = vrot.lane.b32.xlu2 %v2070_v7, %s1691_s24  ;;  %v1039_v6 = vsel %vm1035_vm7, %v1006_v42, %v755_v63 }
  0xbb   : > { %v761_v35 = vpop.permute.xlu1 %760  ;;  %v1072_v54 = vsel %vm1068_vm8, %v1039_v6, %v792_v12 }
  0xbc   : > { %v798_v17 = vpop.permute.xlu0 %797  ;;  %v734_v49 = vpop.permute.xlu2 %733 }
  0xc1   : > { %639 = vrot.lane.b32.xlu1 %v1854_v40, %s1687_s20  ;;  %v1045_v40 = vsel %vm1035_vm7, %v1012_v34, %v761_v35 }
  0xc2   : > { %889 = vrot.lane.b32.xlu0 %v2088_v52, %s1692_s25  ;;  %645 = vrot.lane.b32.xlu2 %v1875_v56, %s1687_s20  ;;  %v1078_v12 = vsel %vm1068_vm8, %v1045_v40, %v798_v17 }
  0xc3   : > { %v839_v53 = vpop.permute.xlu1 %838  ;;  %v1111_v45 = vsel %vm1101_vm9, %v1078_v12, %v845_v41  ;;  %v921_v41 = vsel %vm903_vm3, %v1846_v31, %v569_v13 }
  0xc4   : > { %v1105_v4 = vsel %vm1101_vm9, %v1072_v54, %v839_v53  ;;  %v874_v36 = vpop.permute.xlu0 %873  ;;  %v563_v63 = vpop.permute.xlu2 %562 }
  0xc5   : > { %v1138_v61 = vsel %vm1134_vm10, %v1105_v4, %v874_v36 }
  0xc6   : > { %1613 = vmatmul.msk.bf16.gmra.mxu0 %vm1187_vm11, %v1138_v61  ;;  %v224_v61 = vld [vmem:[%s1727_s17 + $0xbc] sm:$0x1] }
  0xc9   : > { %895 = vrot.lane.b32.xlu1 %v2107_v2, %s1692_s25 }
  0xca   : > { %682 = vrot.lane.b32.xlu0 %v1942_v37, %s1685_s18  ;;  %676 = vrot.lane.b32.xlu2 %v1767_v39, %s1685_s18 }
  0xcb   : > { %v880_v56 = vpop.permute.xlu1 %879 }
  0xcc   : > { %v650_v3 = vpop.permute.xlu0 %649  ;;  %v1144_v5 = vsel %vm1134_vm10, %v1111_v45, %v880_v56  ;;  %v644_v28 = vpop.permute.xlu2 %643 }
  0xcd   : > { %1616 = vmatmul.msk.bf16.vlgmr.msra.gmra.mxu1 %vm1187_vm11, %v1144_v5  ;;  %v954_v30 = vsel %vm936_vm4, %v921_v41, %v650_v3 }
  0xd1   : > { %723 = vrot.lane.b32.xlu1 %v1788_v60, %s1689_s22 }
  0xd2   : > { %758 = vrot.lane.b32.xlu0 %v1812_v11, %s1688_s21  ;;  %729 = vrot.lane.b32.xlu2 %v1975_v9, %s1689_s22 }
  0xd3   : > { %v687_v33 = vpop.permute.xlu1 %686 }
  0xd4   : > { %v769_v39 = vpop.permute.xlu0 %768  ;;  %v681_v35 = vpop.permute.xlu2 %680  ;;  %v987_v48 = vsel %vm969_vm5, %v954_v30, %v687_v33  ;;  %v342_v33 = vunpack.c.l.b16 %v224_v61 }
  0xd5   : > { %v1020_v0 = vsel %vm1002_vm6, %v987_v48, %v734_v49 }
  0xd6   : > { %v1053_v17 = vsel %vm1035_vm7, %v1020_v0, %v769_v39  ;;  %v358_v39 = vpack.c.b16 %v342_v33, %v342_v33 }
  0xd9   : > { %764 = vrot.lane.b32.xlu1 %v1978_v10, %s1688_s21 }
  0xda   : > { %801 = vrot.lane.b32.xlu0 %v1846_v31, %s1690_s23  ;;  %795 = vrot.lane.b32.xlu2 %v1806_v8, %s1690_s23 }
  0xdb   : > { %v806_v60 = vpop.permute.xlu1 %805 }
  0xdc   : > { %v853_v11 = vpop.permute.xlu0 %852  ;;  %v757_v13 = vpop.permute.xlu2 %756  ;;  %v1086_v57 = vsel %vm1068_vm8, %v1053_v17, %v806_v60 }
  0xdd   : > { %v1119_v21 = vsel %vm1101_vm9, %v1086_v57, %v853_v11 }
  0xe1   : > { %842 = vrot.lane.b32.xlu1 %v1823_v18, %s1691_s24 }
  0xe2   : > { %877 = vrot.lane.b32.xlu0 %v1837_v26, %s1692_s25  ;;  %848 = vrot.lane.b32.xlu2 %v1884_v62, %s1691_s24 }
  0xe3   : > { %v638_v42 = vpop.permute.xlu1 %637 }
  0xe4   : > { %v888_v6 = vpop.permute.xlu0 %887  ;;  %v800_v51 = vpop.permute.xlu2 %799  ;;  %v942_v54 = vsel %vm936_vm4, %v909_v24, %v638_v42  ;;  %v548_v42 = vshll.u32 %v358_v39, 16  ;;  %v631_v24 = vrot.slane %v358_v39, 1 }
  0xe5   : > { %v1152_v49 = vsel %vm1134_vm10, %v1119_v21, %v888_v6 }
  0xe6   : > { %1620 = vmatmul.msk.bf16.vlgmr.msra.gmra.mxu2 %vm1187_vm11, %v1152_v49  ;;  %v550_v6 = vrot.slane %v548_v42, 1 }
  0xe9   : > { %883 = vrot.lane.b32.xlu1 %v1878_v58, %s1692_s25 }
  0xea   : > { %578 = vrot.lane.b32.xlu0 %v2038_v22, %s1686_s19  ;;  %572 = vrot.lane.b32.xlu2 %v1909_v25, %s1686_s19 }
  0xeb   : > { %v675_v18 = vpop.permute.xlu1 %674 }
  0xec   : > { %v722_v26 = vpop.permute.xlu0 %721  ;;  %v876_v44 = vpop.permute.xlu2 %875  ;;  %v975_v34 = vsel %vm969_vm5, %v942_v54, %v675_v18 }
  0xed   : > { %v1008_v36 = vsel %vm1002_vm6, %v975_v34, %v722_v26 }
  0xee   : > { %v1041_v55 = vsel %vm1035_vm7, %v1008_v36, %v757_v13 }
  0xf1   : > { %653 = vrot.lane.b32.xlu1 %v1919_v29, %s1687_s20  ;;  %v915_v29 = vsel %vm903_vm3, %v1806_v8, %v563_v63 }
  0xf2   : > { %690 = vrot.lane.b32.xlu0 %v2041_v27, %s1685_s18  ;;  %659 = vrot.lane.b32.xlu2 %v2053_v43, %s1687_s20  ;;  %v948_v40 = vsel %vm936_vm4, %v915_v29, %v644_v28  ;;  %v2184_v28 = vld [vmem:[%s1727_s17 + $0xb4] sm:$0xff] }
  0xf3   : > { %v728_v53 = vpop.permute.xlu1 %727  ;;  %v981_v8 = vsel %vm969_vm5, %v948_v40, %v681_v35  ;;  %v543_v35 = vshll.u32 %v2184_v28, 16  ;;  %v541_v17 = vshrl.u32 %v2184_v28, 16 }
  0xf4   : > { %v763_v25 = vpop.permute.xlu0 %762  ;;  %v2164_v4 = vpop.permute.xlu2 %576  ;;  %v1014_v56 = vsel %vm1002_vm6, %v981_v8, %v728_v53 }
  0xf5   : > { %v1047_v41 = vsel %vm1035_vm7, %v1014_v56, %v763_v25  ;;  %v545_v57 = vrot.slane %v543_v35, 1  ;;  %v929_v61 = vsel %vm903_vm3, %v1962_v50, %v2164_v4 }
  0xf6   : > { %v1080_v48 = vsel %vm1068_vm8, %v1047_v41, %v800_v51 }
  0xf7   : > { %v546_v21 = vor.u32 %v545_v57, %v541_v17 }
  0xf9   : > { %696 = vrot.lane.b32.xlu1 %v2035_v14, %s1685_s18  ;;  %v2207_v26 = vsel %vm359_vm0, %v546_v21, %v550_v6 }
  0xfa   : > { %743 = vrot.lane.b32.xlu0 %v2064_v19, %s1689_s22  ;;  %737 = vrot.lane.b32.xlu2 %v2070_v7, %s1689_s22 }
  0xfb   : > { %v794_v1 = vpop.permute.xlu1 %793 }
  0xfc   : > { %v1074_v63 = vsel %vm1068_vm8, %v1041_v55, %v794_v1  ;;  %v841_v12 = vpop.permute.xlu0 %840  ;;  %v689_v3 = vpop.permute.xlu2 %688 }
  0xfd   : > { %v1107_v45 = vsel %vm1101_vm9, %v1074_v63, %v841_v12 }
  0xfe   : > { %v1140_v5 = vsel %vm1134_vm10, %v1107_v45, %v876_v44  ;;  %v630_v44 = vrot.slane %v2184_v28, 1  ;;  %v227_v45 = vld [vmem:[%s1727_s17 + $0xc8] sm:$0x1] }
  0xff   : > { %1614 = vmatmul.msk.bf16.gmra.mxu0 %vm1187_vm11, %v1140_v5  ;;  %v703_v41 = vunpack.c.l.b16 %v227_v45 }
 0x100   : > { %v2217_v25 = vsel %vm584_vm1, %v630_v44, %v631_v24 }
 0x101   : > { %772 = vrot.lane.b32.xlu1 %v2088_v52, %s1688_s21 }
 0x102   : > { %809 = vrot.lane.b32.xlu0 %v1962_v50, %s1690_s23  ;;  %778 = vrot.lane.b32.xlu2 %v2107_v2, %s1688_s21 }
 0x103   : > { %v847_v30 = vpop.permute.xlu1 %846 }
 0x104   : > { %v1113_v60 = vsel %vm1101_vm9, %v1080_v48, %v847_v30  ;;  %v882_v11 = vpop.permute.xlu0 %881  ;;  %v742_v13 = vpop.permute.xlu2 %741  ;;  %v704_v30 = vpack.c.b16 %v703_v41, %v703_v41 }
 0x105   : > { %v1146_v0 = vsel %vm1134_vm10, %v1113_v60, %v882_v11 }
 0x106   : > { %1617 = vmatmul.msk.bf16.gmra.mxu1 %vm1187_vm11, %v1146_v0  ;;  %v713_v57 = vshll.u32 %v704_v30, 16 }
 0x108   : > { %v715_v21 = vrot.slane %v713_v57, 1 }
 0x109   : > { %815 = vrot.lane.b32.xlu1 %v2184_v28, %s1690_s23 }
 0x10a   : > { %856 = vrot.lane.b32.xlu0 %v1997_v32, %s1691_s24  ;;  %566 = vrot.lane.b32.xlu2 %v1975_v9, %s1686_s19 }
 0x10b   : > { %v571_v49 = vpop.permute.xlu1 %570 }
 0x10c   : > { %v652_v51 = vpop.permute.xlu0 %651  ;;  %v808_v18 = vpop.permute.xlu2 %807 }
 0x111   : > { %862 = vrot.lane.b32.xlu1 %v2207_v26, %s1691_s24 }
 0x112   : > { %891 = vrot.lane.b32.xlu0 %v2017_v46, %s1692_s25  ;;  %647 = vrot.lane.b32.xlu2 %v1978_v10, %s1687_s20 }
 0x113   : > { %v658_v53 = vpop.permute.xlu1 %657 }
 0x114   : > { %v695_v54 = vpop.permute.xlu0 %694  ;;  %v855_v9 = vpop.permute.xlu2 %854  ;;  %v962_v63 = vsel %vm936_vm4, %v929_v61, %v658_v53 }
 0x119   : > { %897 = vrot.lane.b32.xlu1 %v2217_v25, %s1692_s25 }
 0x11a   : > { %731 = vrot.lane.b32.xlu0 %v1884_v62, %s1689_s22  ;;  %684 = vrot.lane.b32.xlu2 %v1846_v31, %s1685_s18  ;;  %v923_v62 = vsel %vm903_vm3, %v1867_v47, %v571_v49 }
 0x11b   : > { %v736_v34 = vpop.permute.xlu1 %735  ;;  %v956_v31 = vsel %vm936_vm4, %v923_v62, %v652_v51  ;;  %v750_v62 = vrot.slane %v704_v30, 1 }
 0x11c   : > { %v771_v29 = vpop.permute.xlu0 %770  ;;  %v2225_v36 = vpop.permute.xlu2 %645  ;;  %v989_v55 = vsel %vm969_vm5, %v956_v31, %v689_v3 }
 0x121   : > { %766 = vrot.lane.b32.xlu1 %v1878_v58, %s1688_s21  ;;  %v1022_v58 = vsel %vm1002_vm6, %v989_v55, %v736_v34 }
 0x122   : > { %850 = vrot.lane.b32.xlu0 %v1900_v20, %s1691_s24  ;;  %803 = vrot.lane.b32.xlu2 %v1867_v47, %s1690_s23 }
 0x123   : > { %v777_v10 = vpop.permute.xlu1 %776 }
 0x124   : > { %v814_v40 = vpop.permute.xlu0 %813  ;;  %v677_v1 = vpop.permute.xlu2 %676 }
 0x129   : > { %885 = vrot.lane.b32.xlu1 %v1896_v15, %s1692_s25  ;;  %v1055_v15 = vsel %vm1035_vm7, %v1022_v58, %v771_v29 }
 0x12a   : > { %580 = vrot.lane.b32.xlu0 %v2064_v19, %s1686_s19  ;;  %574 = vrot.lane.b32.xlu2 %v2070_v7, %s1686_s19  ;;  %v1088_v19 = vsel %vm1068_vm8, %v1055_v15, %v808_v18  ;;  %v995_v7 = vsel %vm969_vm5, %v962_v63, %v695_v54  ;;  %v1676_v18 = vld [vmem:[%s1727_s17 + $0x24] sm:$0xff] }
 0x12b   : > { %v565_v20 = vpop.permute.xlu1 %564  ;;  %v1121_v4 = vsel %vm1101_vm9, %v1088_v19, %v855_v9  ;;  %v1028_v33 = vsel %vm1002_vm6, %v995_v7, %v742_v13  ;;  %v230_v9 = vld [vmem:[%s1727_s17 + $0xd4] sm:$0x1] }
 0x12c   : > { %v861_v47 = vpop.permute.xlu0 %860  ;;  %v2247_v8 = vpop.permute.xlu2 %729  ;;  %v917_v34 = vsel %vm903_vm3, %v1831_v23, %v565_v20  ;;  %v822_v31 = vunpack.c.l.b16 %v230_v9 }
 0x12d   : > { %v950_v55 = vsel %vm936_vm4, %v917_v34, %v2225_v36 }
 0x131   : > { %655 = vrot.lane.b32.xlu1 %v2088_v52, %s1687_s20  ;;  %v1061_v52 = vsel %vm1035_vm7, %v1028_v33, %v777_v10 }
 0x132   : > { %692 = vrot.lane.b32.xlu0 %v1962_v50, %s1685_s18  ;;  %661 = vrot.lane.b32.xlu2 %v2107_v2, %s1687_s20  ;;  %v2266_v50 = vld [vmem:[%s1727_s17 + $0xc0] sm:$0xff]  ;;  %v1094_v2 = vsel %vm1068_vm8, %v1061_v52, %v814_v40  ;;  %v1647_v40 = vld [vmem:[%s1727_s17 + $0xcc] sm:$0xff] }
 0x133   : > { %v640_v12 = vpop.permute.xlu1 %639  ;;  %v1127_v39 = vsel %vm1101_vm9, %v1094_v2, %v861_v47  ;;  %v708_v48 = vshll.u32 %v2266_v50, 16  ;;  %v706_v13 = vshrl.u32 %v2266_v50, 16  ;;  %v749_v10 = vrot.slane %v2266_v50, 1 }
 0x134   : > { %v890_v56 = vpop.permute.xlu0 %889  ;;  %v796_v5 = vpop.permute.xlu2 %795  ;;  %v823_v47 = vpack.c.b16 %v822_v31, %v822_v31  ;;  %v827_v61 = vshll.u32 %v1647_v40, 16  ;;  %v825_v7 = vshrl.u32 %v1647_v40, 16 }
 0x135   : > { %v1154_v3 = vsel %vm1134_vm10, %v1121_v4, %v890_v56  ;;  %v710_v17 = vrot.slane %v708_v48, 1  ;;  %v751_v23 = vsel %vm584_vm1, %v749_v10, %v750_v62 }
 0x136   : > { %1621 = vmatmul.msk.bf16.gmra.mxu2 %vm1187_vm11, %v1154_v3  ;;  %v832_v4 = vshll.u32 %v823_v47, 16 }
 0x139   : > { %698 = vrot.lane.b32.xlu1 %v2184_v28, %s1685_s18 }
 0x13a   : > { %745 = vrot.lane.b32.xlu0 %v2207_v26, %s1689_s22  ;;  %739 = vrot.lane.b32.xlu2 %v1997_v32, %s1689_s22  ;;  %v711_v32 = vor.u32 %v710_v17, %v706_v13 }
 0x13b   : > { %v896_v35 = vpop.permute.xlu1 %895 }
 0x13c   : > { %v683_v60 = vpop.permute.xlu0 %682  ;;  %v1160_v11 = vsel %vm1134_vm10, %v1127_v39, %v896_v35  ;;  %v849_v0 = vpop.permute.xlu2 %848  ;;  %v716_v51 = vsel %vm359_vm0, %v711_v32, %v715_v21  ;;  %v869_v39 = vrot.slane %v823_v47, 1 }
 0x13d   : > { %1624 = vmatmul.msk.bf16.vlgmr.msra.gmra.mxu3 %vm1187_vm11, %v1160_v11 }
 0x141   : > { %774 = vrot.lane.b32.xlu1 %v2017_v46, %s1688_s21  ;;  %v911_v46 = vsel %vm903_vm3, %v1676_v18, %v1985_v16 }
 0x142   : > { %811 = vrot.lane.b32.xlu0 %v2007_v38, %s1690_s23  ;;  %780 = vrot.lane.b32.xlu2 %v2217_v25, %s1688_s21  ;;  %v944_v44 = vsel %vm936_vm4, %v911_v46, %v640_v12  ;;  %v829_v12 = vrot.slane %v827_v61, 1 }
 0x143   : > { %v724_v42 = vpop.permute.xlu1 %723  ;;  %v977_v53 = vsel %vm969_vm5, %v944_v44, %v677_v1  ;;  %v983_v1 = vsel %vm969_vm5, %v950_v55, %v683_v60 }
 0x144   : > { %v759_v6 = vpop.permute.xlu0 %758  ;;  %v2286_v49 = vpop.permute.xlu2 %572  ;;  %v1010_v16 = vsel %vm1002_vm6, %v977_v53, %v724_v42  ;;  %v1016_v36 = vsel %vm1002_vm6, %v983_v1, %v2247_v8  ;;  %v830_v3 = vor.u32 %v829_v12, %v825_v7 }
 0x145   : > { %v925_v57 = vsel %vm903_vm3, %v1881_v59, %v2286_v49 }
 0x149   : > { %817 = vrot.lane.b32.xlu1 %v2266_v50, %s1690_s23 }
 0x14a   : > { %864 = vrot.lane.b32.xlu0 %v716_v51, %s1691_s24  ;;  %858 = vrot.lane.b32.xlu2 %v2038_v22, %s1691_s24  ;;  %v1043_v22 = vsel %vm1035_vm7, %v1010_v16, %v759_v6 }
 0x14b   : > { %v765_v24 = vpop.permute.xlu1 %764  ;;  %v1076_v20 = vsel %vm1068_vm8, %v1043_v22, %v796_v5  ;;  %v834_v5 = vrot.slane %v832_v4, 1 }
 0x14c   : > { %v802_v54 = vpop.permute.xlu0 %801  ;;  %v2303_v29 = vpop.permute.xlu2 %659 }
 0x14d   : > { %v835_v2 = vsel %vm359_vm0, %v830_v3, %v834_v5 }
 0x151   : > { %893 = vrot.lane.b32.xlu1 %v2053_v43, %s1692_s25  ;;  %v1049_v43 = vsel %vm1035_vm7, %v1016_v36, %v765_v24 }
 0x152   : > { %582 = vrot.lane.b32.xlu0 %v2207_v26, %s1686_s19  ;;  %899 = vrot.lane.b32.xlu2 %v751_v23, %s1692_s25  ;;  %v1082_v56 = vsel %vm1068_vm8, %v1049_v43, %v802_v54 }
 0x153   : > { %v843_v58 = vpop.permute.xlu1 %842  ;;  %v1115_v45 = vsel %vm1101_vm9, %v1082_v56, %v849_v0 }
 0x154   : > { %v1109_v15 = vsel %vm1101_vm9, %v1076_v20, %v843_v58  ;;  %v878_v63 = vpop.permute.xlu0 %877  ;;  %v738_v26 = vpop.permute.xlu2 %737 }
 0x155   : > { %v1142_v19 = vsel %vm1134_vm10, %v1109_v15, %v878_v63 }
 0x156   : > { %1615 = vmatmul.msk.bf16.gmra.mxu0 %vm1187_vm11, %v1142_v19 }
 0x159   : > { %663 = vrot.lane.b32.xlu1 %v2217_v25, %s1687_s20  ;;  %v868_v25 = vrot.slane %v1647_v40, 1 }
 0x15a   : > { %747 = vrot.lane.b32.xlu0 %v716_v51, %s1689_s22  ;;  %700 = vrot.lane.b32.xlu2 %v2266_v50, %s1685_s18 }
 0x15b   : > { %v884_v8 = vpop.permute.xlu1 %883  ;;  %v870_v50 = vsel %vm584_vm1, %v868_v25, %v869_v39 }
 0x15c   : > { %v579_v33 = vpop.permute.xlu0 %578  ;;  %v1148_v52 = vsel %vm1134_vm10, %v1115_v45, %v884_v8  ;;  %v779_v41 = vpop.permute.xlu2 %778 }
 0x15d   : > { %1618 = vmatmul.msk.bf16.gmra.mxu1 %vm1187_vm11, %v1148_v52  ;;  %v931_v18 = vsel %vm903_vm3, %v2007_v38, %v579_v33 }
 0x15e   : > { %v964_v53 = vsel %vm936_vm4, %v931_v18, %v2303_v29 }
 0x161   : > { %782 = vrot.lane.b32.xlu1 %v751_v23, %s1688_s21 }
 0x162   : > { %866 = vrot.lane.b32.xlu0 %v835_v2, %s1691_s24  ;;  %819 = vrot.lane.b32.xlu2 %v1647_v40, %s1690_s23 }
 0x163   : > { %v654_v35 = vpop.permute.xlu1 %653 }
 0x164   : > { %v691_v30 = vpop.permute.xlu0 %690  ;;  %v567_v48 = vpop.permute.xlu2 %566  ;;  %v958_v32 = vsel %vm936_vm4, %v925_v57, %v654_v35 }
 0x165   : > { %v991_v6 = vsel %vm969_vm5, %v958_v32, %v691_v30  ;;  %v919_v1 = vsel %vm903_vm3, %v1942_v37, %v567_v48 }
 0x166   : > { %v1024_v46 = vsel %vm1002_vm6, %v991_v6, %v738_v26 }
 0x169   : > { %901 = vrot.lane.b32.xlu1 %v870_v50, %s1692_s25 }
 0x16b   : > { %v697_v60 = vpop.permute.xlu1 %696 }
 0x16c   : > { %v744_v11 = vpop.permute.xlu0 %743  ;;  %v648_v0 = vpop.permute.xlu2 %647  ;;  %v997_v59 = vsel %vm969_vm5, %v964_v53, %v697_v60 }
 0x16d   : > { %v1030_v38 = vsel %vm1002_vm6, %v997_v59, %v744_v11  ;;  %v952_v23 = vsel %vm936_vm4, %v919_v1, %v648_v0 }
 0x16e   : > { %v1063_v10 = vsel %vm1035_vm7, %v1030_v38, %v779_v41 }
 0x173   : > { %v773_v13 = vpop.permute.xlu1 %772 }
 0x174   : > { %v810_v17 = vpop.permute.xlu0 %809  ;;  %v685_v42 = vpop.permute.xlu2 %684  ;;  %v1057_v24 = vsel %vm1035_vm7, %v1024_v46, %v773_v13 }
 0x175   : > { %v1090_v49 = vsel %vm1068_vm8, %v1057_v24, %v810_v17  ;;  %v985_v58 = vsel %vm969_vm5, %v952_v23, %v685_v42 }
 0x17b   : > { %v816_v21 = vpop.permute.xlu1 %815 }
 0x17c   : > { %v857_v51 = vpop.permute.xlu0 %856  ;;  %v804_v44 = vpop.permute.xlu2 %803  ;;  %v1096_v40 = vsel %vm1068_vm8, %v1063_v10, %v816_v21 }
 0x17d   : > { %v1123_v9 = vsel %vm1101_vm9, %v1090_v49, %v857_v51 }
 0x183   : > { %v863_v54 = vpop.permute.xlu1 %862 }
 0x184   : > { %v892_v34 = vpop.permute.xlu0 %891  ;;  %v575_v62 = vpop.permute.xlu2 %574  ;;  %v1129_v29 = vsel %vm1101_vm9, %v1096_v40, %v863_v54 }
 0x185   : > { %v1156_v16 = vsel %vm1134_vm10, %v1123_v9, %v892_v34  ;;  %v927_v33 = vsel %vm903_vm3, %v2041_v27, %v575_v62  ;;  %v2397_v34 = vpop.f32.mrf.mxu0 }
 0x186   : > { %1622 = vmatmul.msk.bf16.gmra.mxu2 %vm1187_vm11, %v1156_v16 }
 0x18b   : > { %v898_v31 = vpop.permute.xlu1 %897 }
 0x18c   : > { %v732_v55 = vpop.permute.xlu0 %731  ;;  %v1162_v22 = vsel %vm1134_vm10, %v1129_v29, %v898_v31  ;;  %v662_v47 = vpop.permute.xlu2 %661 }
 0x18d   : > { %1625 = vmatmul.msk.bf16.gmra.mxu3 %vm1187_vm11, %v1162_v22  ;;  %v1018_v61 = vsel %vm1002_vm6, %v985_v58, %v732_v55  ;;  %v2403_v40 = vpop.f32.mrf.mxu0  ;;  %v2407_v31 = vpop.f32.mrf.mxu1 }
 0x193   : > { %v767_v20 = vpop.permute.xlu1 %766 }
 0x194   : > { %v851_v36 = vpop.permute.xlu0 %850  ;;  %v1051_v15 = vsel %vm1035_vm7, %v1018_v61, %v767_v20  ;;  %v740_v7 = vpop.permute.xlu2 %739 }
 0x195   : > { %v1084_v63 = vsel %vm1068_vm8, %v1051_v15, %v804_v44  ;;  %v2405_v29 = vpop.f32.mrf.mxu0  ;;  %v2413_v1 = vpop.f32.mrf.mxu1 }
 0x196   : > { %v1117_v43 = vsel %vm1101_vm9, %v1084_v63, %v851_v36  ;;  %v2427_v63 = vpop.f32.mrf.mxu2 }
 0x19b   : > { %v886_v19 = vpop.permute.xlu1 %885 }
 0x19c   : > { %v581_v26 = vpop.permute.xlu0 %580  ;;  %v1150_v37 = vsel %vm1134_vm10, %v1117_v43, %v886_v19  ;;  %v781_v56 = vpop.permute.xlu2 %780 }
 0x19d   : > { %1619 = vmatmul.msk.bf16.gmra.mxu1 %vm1187_vm11, %v1150_v37  ;;  %v933_v3 = vsel %vm903_vm3, %v2035_v14, %v581_v26  ;;  %v2409_v55 = vpop.f32.mrf.mxu0  ;;  %v2415_v23 = vpop.f32.mrf.mxu1 }
 0x19e   : > { %v966_v41 = vsel %vm936_vm4, %v933_v3, %v662_v47  ;;  %v1313_v47 = vadd.f32 %v2403_v40, %v2397_v34 }
 0x1a0   : > { %v1314_v36 = vadd.f32 %v1313_v47, %v2405_v29 }
 0x1a2   : > { %v1315_v15 = vadd.f32 %v1314_v36, %v2409_v55 }
 0x1a3   : > { %v656_v12 = vpop.permute.xlu1 %655 }
 0x1a4   : > { %v693_v4 = vpop.permute.xlu0 %692  ;;  %v859_v5 = vpop.permute.xlu2 %858  ;;  %v960_v39 = vsel %vm936_vm4, %v927_v33, %v656_v12 }
 0x1a5   : > { %v993_v30 = vsel %vm969_vm5, %v960_v39, %v693_v4  ;;  %v2411_v22 = vpop.f32.mrf.mxu0  ;;  %v2423_v61 = vpop.f32.mrf.mxu1 }
 0x1a6   : > { %v1026_v60 = vsel %vm1002_vm6, %v993_v30, %v740_v7  ;;  %v1316_v43 = vadd.f32 %v1315_v15, %v2411_v22  ;;  %v2437_v4 = vpop.f32.mrf.mxu2 }
 0x1ab   : > { %v699_v8 = vpop.permute.xlu1 %698 }
 0x1ac   : > { %v746_v45 = vpop.permute.xlu0 %745  ;;  %v999_v25 = vsel %vm969_vm5, %v966_v41, %v699_v8  ;;  %v900_v14 = vpop.permute.xlu2 %899 }
 0x1ad   : > { %v1032_v35 = vsel %vm1002_vm6, %v999_v25, %v746_v45  ;;  %v2417_v58 = vpop.f32.mrf.mxu0 }
 0x1ae   : > { %v1065_v48 = vsel %vm1035_vm7, %v1032_v35, %v781_v56  ;;  %v1317_v19 = vadd.f32 %v1316_v43, %v2417_v58 }
 0x1b3   : > { %v775_v52 = vpop.permute.xlu1 %774 }
 0x1b4   : > { %v812_v2 = vpop.permute.xlu0 %811  ;;  %v1059_v0 = vsel %vm1035_vm7, %v1026_v60, %v775_v52  ;;  %v701_v46 = vpop.permute.xlu2 %700 }
 0x1b5   : > { %v1092_v57 = vsel %vm1068_vm8, %v1059_v0, %v812_v2 }
 0x1b6   : > { %v1125_v42 = vsel %vm1101_vm9, %v1092_v57, %v859_v5 }
 0x1b9   : > { %v2443_v3 = vpop.f32.mrf.mxu2 }
 0x1bb   : > { %v818_v50 = vpop.permute.xlu1 %817 }
 0x1bc   : > { %v1098_v27 = vsel %vm1068_vm8, %v1065_v48, %v818_v50  ;;  %v865_v11 = vpop.permute.xlu0 %864  ;;  %v820_v9 = vpop.permute.xlu2 %819 }
 0x1bd   : > { %v1131_v13 = vsel %vm1101_vm9, %v1098_v27, %v865_v11 }
 0x1be   : > { %v1164_v17 = vsel %vm1134_vm10, %v1131_v13, %v900_v14 }
 0x1bf   : > { %1626 = vmatmul.msk.bf16.gmra.mxu3 %vm1187_vm11, %v1164_v17 }
 0x1c0   : > { %v2449_v41 = vpop.f32.mrf.mxu3 }
 0x1c1   : > { %v2452_v25 = vpop.f32.mrf.mxu2 }
 0x1c3   : > { %v894_v32 = vpop.permute.xlu1 %893 }
 0x1c4   : > { %v1158_v21 = vsel %vm1134_vm10, %v1125_v42, %v894_v32  ;;  %v583_v6 = vpop.permute.xlu0 %582 }
 0x1c5   : > { %1623 = vmatmul.msk.bf16.gmra.mxu2 %vm1187_vm11, %v1158_v21  ;;  %v935_v51 = vsel %vm903_vm3, %v2184_v28, %v583_v6 }
 0x1c8   : > { %v2458_v48 = vpop.f32.mrf.mxu3 }
 0x1cb   : > { %v664_v18 = vpop.permute.xlu1 %663 }
 0x1cc   : > { %v968_v44 = vsel %vm936_vm4, %v935_v51, %v664_v18  ;;  %v748_v24 = vpop.permute.xlu0 %747 }
 0x1cd   : > { %v1001_v53 = vsel %vm969_vm5, %v968_v44, %v701_v46 }
 0x1ce   : > { %v1034_v49 = vsel %vm1002_vm6, %v1001_v53, %v748_v24 }
 0x1d3   : > { %v783_v59 = vpop.permute.xlu1 %782  ;;  %v2419_v20 = vpop.f32.mrf.mxu0 }
 0x1d4   : > { %v1067_v54 = vsel %vm1035_vm7, %v1034_v49, %v783_v59  ;;  %v867_v38 = vpop.permute.xlu0 %866  ;;  %v1318_v7 = vadd.f32 %v1317_v19, %v2419_v20 }
 0x1d5   : > { %v1100_v16 = vsel %vm1068_vm8, %v1067_v54, %v820_v9 }
 0x1d6   : > { %v1133_v28 = vsel %vm1101_vm9, %v1100_v16, %v867_v38 }
 0x1da   : > { %v2431_v26 = vpop.f32.mrf.mxu1 }
 0x1db   : > { %v902_v10 = vpop.permute.xlu1 %901  ;;  %v2433_v37 = vpop.f32.mrf.mxu0 }
 0x1dc   : > { %v1166_v62 = vsel %vm1134_vm10, %v1133_v28, %v902_v10  ;;  %v1319_v12 = vadd.f32 %v1318_v7, %v2433_v37 }
 0x1dd   : > { %1627 = vmatmul.msk.bf16.gmra.mxu3 %vm1187_vm11, %v1166_v62 }
 0x1de   : > { %v1320_v56 = vadd.f32 %v1319_v12, %v2407_v31 }
 0x1e0   : > { %v1321_v45 = vadd.f32 %v1320_v56, %v2413_v1 }
 0x1e2   : > { %v2440_v8 = vpop.f32.mrf.mxu1  ;;  %v1322_v5 = vadd.f32 %v1321_v45, %v2415_v23 }
 0x1e4   : > { %v1323_v52 = vadd.f32 %v1322_v5, %v2423_v61 }
 0x1e6   : > { %v1324_v2 = vadd.f32 %v1323_v52, %v2431_v26 }
 0x1e8   : > { %v1325_v39 = vadd.f32 %v1324_v2, %v2440_v8 }
 0x209   : > { %v2461_v14 = vpop.f32.mrf.mxu2 }
 0x210   : > { %v2464_v27 = vpop.f32.mrf.mxu3 }
 0x211   : > { %v2467_v0 = vpop.f32.mrf.mxu2 }
 0x218   : > { %v2471_v57 = vpop.f32.mrf.mxu3 }
 0x21a   : > { %v2446_v33 = vpop.f32.mrf.mxu1 }
 0x21b   : > { %v1326_v30 = vadd.f32 %v1325_v39, %v2446_v33 }
 0x222   : > { %v2455_v35 = vpop.f32.mrf.mxu1 }
 0x223   : > { %v1327_v50 = vadd.f32 %v1326_v30, %v2455_v35 }
 0x225   : > { %v1328_v60 = vadd.f32 %v1327_v50, %v2427_v63 }
 0x227   : > { %v1329_v11 = vadd.f32 %v1328_v60, %v2437_v4 }
 0x229   : > { %v1330_v13 = vadd.f32 %v1329_v11, %v2443_v3 }
 0x22b   : > { %v1331_v17 = vadd.f32 %v1330_v13, %v2452_v25 }
 0x22d   : > { %v1332_v32 = vadd.f32 %v1331_v17, %v2461_v14 }
 0x22f   : > { %v1333_v21 = vadd.f32 %v1332_v32, %v2467_v0 }
 0x242   : > { %v2477_v6 = vpop.f32.mrf.mxu3 }
 0x248   : > { %v2473_v42 = vpop.f32.mrf.mxu2 }
 0x249   : > { %v1334_v51 = vadd.f32 %v1333_v21, %v2473_v42 }
 0x24a   : > { %v2485_v53 = vpop.f32.mrf.mxu3 }
 0x250   : > { %v2480_v18 = vpop.f32.mrf.mxu2 }
 0x251   : > { %v1335_v46 = vadd.f32 %v1334_v51, %v2480_v18 }
 0x253   : > { %v1336_v44 = vadd.f32 %v1335_v46, %v2449_v41 }
 0x255   : > { %v1337_v24 = vadd.f32 %v1336_v44, %v2458_v48 }
 0x257   : > { %v1338_v59 = vadd.f32 %v1337_v24, %v2464_v27 }
 0x259   : > { %v1339_v49 = vadd.f32 %v1338_v59, %v2471_v57 }
 0x25b   : > { %v1340_v9 = vadd.f32 %v1339_v49, %v2477_v6 }
 0x25d   : > { %v1341_v16 = vadd.f32 %v1340_v9, %v2485_v53 }
 0x260   : > { %v2489_v54 = vpop.f32.mrf.mxu3 }
 0x261   : > { %v1342_v38 = vadd.f32 %v1341_v16, %v2489_v54 }
 0x268   : > { %v2494_v28 = vpop.f32.mrf.mxu3 }
 0x269   : > { %v1343_v10 = vadd.f32 %v1342_v38, %v2494_v28 }
 0x26b   : > { %v1344_v62 = vrot.slane %v1343_v10, 4 }
 0x26d   : > { %v1345_v47 = vadd.f32 %v1344_v62, %v1343_v10 }
 0x26f   : > { %v1346_v36 = vrot.slane %v1345_v47, 2 }
 0x271   : > { %v1347_v15 = vadd.f32 %v1346_v36, %v1345_v47 }
 0x273   : > { %v1348_v43 = vrot.slane %v1347_v15, 1 }
 0x275   : > { %v1349_v19 = vadd.f32 %v1348_v43, %v1347_v15 }
 0x277   : > { %1452 = vst [vmem:[%s172_s7] sm:$0x1] %v1349_v19  ;;  %v2501_v7 = vmul.f32 0.00390625, %v1349_v19 }
 0x279   : > { %v1351_v12 = vsub.f32 %v2397_v34, %v2501_v7  ;;  %v1352_v56 = vsub.f32 %v2403_v40, %v2501_v7  ;;  %v1353_v45 = vsub.f32 %v2405_v29, %v2501_v7  ;;  %v1354_v2 = vsub.f32 %v2409_v55, %v2501_v7 }
 0x27a   : > { %v1355_v39 = vsub.f32 %v2411_v22, %v2501_v7  ;;  %v1356_v60 = vsub.f32 %v2417_v58, %v2501_v7  ;;  %v1357_v40 = vsub.f32 %v2419_v20, %v2501_v7  ;;  %v1358_v17 = vsub.f32 %v2433_v37, %v2501_v7 }
 0x27b   : > { %v1383_v5 = vmul.f32 %v1351_v12, %v1351_v12  ;;  %v1384_v52 = vmul.f32 %v1352_v56, %v1352_v56  ;;  %v1385_v30 = vmul.f32 %v1353_v45, %v1353_v45  ;;  %v1386_v34 = vmul.f32 %v1354_v2, %v1354_v2 }
 0x27c   : > { %v1387_v13 = vmul.f32 %v1355_v39, %v1355_v39  ;;  %v1388_v32 = vmul.f32 %v1356_v60, %v1356_v60  ;;  %v1359_v22 = vsub.f32 %v2407_v31, %v2501_v7  ;;  %v1389_v21 = vmul.f32 %v1357_v40, %v1357_v40 }
 0x27d   : > { %v1415_v50 = vadd.f32 %v1384_v52, %v1383_v5  ;;  %v1360_v58 = vsub.f32 %v2413_v1, %v2501_v7  ;;  %v1390_v46 = vmul.f32 %v1358_v17, %v1358_v17  ;;  %v1361_v20 = vsub.f32 %v2415_v23, %v2501_v7 }
 0x27e   : > { %v1391_v24 = vmul.f32 %v1359_v22, %v1359_v22  ;;  %v1362_v37 = vsub.f32 %v2423_v61, %v2501_v7  ;;  %v1363_v31 = vsub.f32 %v2431_v26, %v2501_v7  ;;  %v1364_v1 = vsub.f32 %v2440_v8, %v2501_v7 }
 0x27f   : > { %v1416_v11 = vadd.f32 %v1415_v50, %v1385_v30  ;;  %v1392_v49 = vmul.f32 %v1360_v58, %v1360_v58  ;;  %v1393_v16 = vmul.f32 %v1361_v20, %v1361_v20  ;;  %v1365_v23 = vsub.f32 %v2446_v33, %v2501_v7 }
 0x280   : > { %v1394_v10 = vmul.f32 %v1362_v37, %v1362_v37  ;;  %v1395_v47 = vmul.f32 %v1363_v31, %v1363_v31  ;;  %v1366_v61 = vsub.f32 %v2455_v35, %v2501_v7  ;;  %v1396_v15 = vmul.f32 %v1364_v1, %v1364_v1 }
 0x281   : > { %v1417_v29 = vadd.f32 %v1416_v11, %v1386_v34  ;;  %v1367_v26 = vsub.f32 %v2427_v63, %v2501_v7  ;;  %v1397_v19 = vmul.f32 %v1365_v23, %v1365_v23  ;;  %v1368_v8 = vsub.f32 %v2437_v4, %v2501_v7 }
 0x282   : > { %v1398_v56 = vmul.f32 %v1366_v61, %v1366_v61  ;;  %v1369_v33 = vsub.f32 %v2443_v3, %v2501_v7  ;;  %v1370_v35 = vsub.f32 %v2452_v25, %v2501_v7  ;;  %v1371_v63 = vsub.f32 %v2461_v14, %v2501_v7 }
 0x283   : > { %v1418_v55 = vadd.f32 %v1417_v29, %v1387_v13  ;;  %v1399_v5 = vmul.f32 %v1367_v26, %v1367_v26  ;;  %v1400_v2 = vmul.f32 %v1368_v8, %v1368_v8  ;;  %v1372_v4 = vsub.f32 %v2467_v0, %v2501_v7 }
 0x284   : > { %v1401_v30 = vmul.f32 %v1369_v33, %v1369_v33  ;;  %v1402_v60 = vmul.f32 %v1370_v35, %v1370_v35  ;;  %v1373_v3 = vsub.f32 %v2473_v42, %v2501_v7  ;;  %v1403_v11 = vmul.f32 %v1371_v63, %v1371_v63 }
 0x285   : > { %v1419_v51 = vadd.f32 %v1418_v55, %v1388_v32  ;;  %v1374_v25 = vsub.f32 %v2480_v18, %v2501_v7  ;;  %v1404_v13 = vmul.f32 %v1372_v4, %v1372_v4  ;;  %v1375_v14 = vsub.f32 %v2449_v41, %v2501_v7 }
 0x286   : > { %v1405_v17 = vmul.f32 %v1373_v3, %v1373_v3  ;;  %v1376_v0 = vsub.f32 %v2458_v48, %v2501_v7  ;;  %v1377_v42 = vsub.f32 %v2464_v27, %v2501_v7  ;;  %v1378_v18 = vsub.f32 %v2471_v57, %v2501_v7 }
 0x287   : > { %v1420_v44 = vadd.f32 %v1419_v51, %v1389_v21  ;;  %v1406_v55 = vmul.f32 %v1374_v25, %v1374_v25  ;;  %v1407_v21 = vmul.f32 %v1375_v14, %v1375_v14  ;;  %v1379_v41 = vsub.f32 %v2477_v6, %v2501_v7 }
 0x288   : > { %v1408_v58 = vmul.f32 %v1376_v0, %v1376_v0  ;;  %v1380_v48 = vsub.f32 %v2485_v53, %v2501_v7  ;;  %v1381_v27 = vsub.f32 %v2489_v54, %v2501_v7  ;;  %v1382_v57 = vsub.f32 %v2494_v28, %v2501_v7 }
 0x289   : > { %v1421_v59 = vadd.f32 %v1420_v44, %v1390_v46  ;;  %v1409_v44 = vmul.f32 %v1377_v42, %v1377_v42  ;;  %v1411_v37 = vmul.f32 %v1379_v41, %v1379_v41 }
 0x28b   : > { %v1422_v9 = vadd.f32 %v1421_v59, %v1391_v24  ;;  %v1410_v24 = vmul.f32 %v1378_v18, %v1378_v18 }
 0x28d   : > { %v1423_v38 = vadd.f32 %v1422_v9, %v1392_v49  ;;  %v1412_v9 = vmul.f32 %v1380_v48, %v1380_v48 }
 0x28f   : > { %v1424_v62 = vadd.f32 %v1423_v38, %v1393_v16  ;;  %v1413_v16 = vmul.f32 %v1381_v27, %v1381_v27  ;;  %v1414_v38 = vmul.f32 %v1382_v57, %v1382_v57 }
 0x291   : > { %v1425_v36 = vadd.f32 %v1424_v62, %v1394_v10 }
 0x293   : > { %v1426_v43 = vadd.f32 %v1425_v36, %v1395_v47 }
 0x295   : > { %v1427_v12 = vadd.f32 %v1426_v43, %v1396_v15 }
 0x297   : > { %v1428_v45 = vadd.f32 %v1427_v12, %v1397_v19 }
 0x299   : > { %v1429_v52 = vadd.f32 %v1428_v45, %v1398_v56 }
 0x29b   : > { %v1430_v39 = vadd.f32 %v1429_v52, %v1399_v5 }
 0x29d   : > { %v1431_v50 = vadd.f32 %v1430_v39, %v1400_v2 }
 0x29f   : > { %v1432_v34 = vadd.f32 %v1431_v50, %v1401_v30 }
 0x2a1   : > { %v1433_v40 = vadd.f32 %v1432_v34, %v1402_v60 }
 0x2a3   : > { %v1434_v29 = vadd.f32 %v1433_v40, %v1403_v11 }
 0x2a5   : > { %v1435_v32 = vadd.f32 %v1434_v29, %v1404_v13 }
 0x2a7   : > { %v1436_v22 = vadd.f32 %v1435_v32, %v1405_v17 }
 0x2a9   : > { %v1437_v51 = vadd.f32 %v1436_v22, %v1406_v55 }
 0x2ab   : > { %v1438_v46 = vadd.f32 %v1437_v51, %v1407_v21 }
 0x2ad   : > { %v1439_v20 = vadd.f32 %v1438_v46, %v1408_v58 }
 0x2af   : > { %v1440_v59 = vadd.f32 %v1439_v20, %v1409_v44 }
 0x2b1   : > { %v1441_v49 = vadd.f32 %v1440_v59, %v1410_v24 }
 0x2b3   : > { %v1442_v31 = vadd.f32 %v1441_v49, %v1411_v37 }
 0x2b5   : > { %v1443_v6 = vadd.f32 %v1442_v31, %v1412_v9 }
 0x2b7   : > { %v1444_v1 = vadd.f32 %v1443_v6, %v1413_v16 }
 0x2b9   : > { %v1445_v10 = vadd.f32 %v1444_v1, %v1414_v38 }
 0x2bb   : > { %v1446_v62 = vrot.slane %v1445_v10, 4 }
 0x2bd   : > { %v1447_v53 = vadd.f32 %v1446_v62, %v1445_v10 }
 0x2bf   : > { %v1448_v23 = vrot.slane %v1447_v53, 2 }
 0x2c1   : > { %v1449_v47 = vadd.f32 %v1448_v23, %v1447_v53 }
 0x2c3   : > { %v1450_v36 = vrot.slane %v1449_v47, 1 }
 0x2c5   : > { %v1451_v54 = vadd.f32 %v1450_v36, %v1449_v47 }
 0x2c7   : > { %1453 = vst [vmem:[%s175_s10] sm:$0x1] %v1451_v54 }
 0x2c8 PF: > { %s14_s12 = sadd.s32 1, %s1683_s12  }
 0x2c9   : > { %p11_p4 = scmp.ge.s32.totalorder %s14_s12, 4  }
 0x2cb   :  { %13 = sbr.rel (!%p11_p4) target bundleno = 1 (0x1), region = 70 }

// kernel: basic_conv_block.3
= control target key start
LH: loop header
LB: loop body
LE: loop exit
PB: predicated region body
PF: predicated region fallthrough
CT: control target
= control target key end

     0   :  { %s1730_s15 = smov 0   ;;  %s2644_s0 = inlined_call_operand.vmem [shape: bf16[2,18,18,4], index: 0, kind: input, shape index: {}]   ;;  %s2645_s1 = inlined_call_operand.vmem [shape: bf16[36,128], index: 1, kind: input, shape index: {}]   ;;  %s2646_s2 = inlined_call_operand.vmem [shape: f32[1,128], index: 2, kind: input, shape index: {}]   ;;  %s2647_s3 = inlined_call_operand.vmem [shape: f32[1,128], index: 3, kind: input, shape index: {}]   ;;  %s2648_s4 = inlined_call_operand.vmem [shape: f32[32,16,128], index: 4, kind: output, shape index: {}]  }
   0x1 LB: > { %s1736_s16 = sadd.s32 4294967295, %s1695_s15   ;;  %p1536_p0 = scmp.ge.s32.totalorder %s1695_s15, 1  ;;  %s1695_s15 = sphi %s1730_s15, %s14_s15  }
   0x2   : > { %p162_p1 = scmp.lt.s32.totalorder %s1695_s15, 3 }
   0x4   : > { %p163_p2 = pnand %p1536_p0, %p162_p1 }
   0x6   : > { %166 = sbr.rel (%p163_p2) target bundleno = 622 (0x26e), region = 36 }
   0xb   : > { %p189_p3 = scmp.lt.s32.totalorder %s1736_s16, 1  ;;  %vm384_vm0 = vsmask.f32 7424  ;;  %s1697_s22 = smov 4   ;;  %vm609_vm1 = vcmask 1046528   ;;  %vm961_vm2 = vcmask 64512  }
   0xc   : > { %s1698_s23 = smov 8   ;;  %s1699_s24 = smov 12   ;;  %vm928_vm3 = vcmask 31744   ;;  %vm994_vm4 = vcmask 97280   ;;  %vm1245_vm5 = vcmask 1041408   ;;  %vm1027_vm6 = vcmask 130048  }
   0xd   : > { %s190_s17 = scalar_select %p189_p3, %s1736_s16, 1  ;;  %vm1060_vm7 = vcmask 162816   ;;  %vm1093_vm8 = vcmask 195584   ;;  %vm1126_vm9 = vcmask 228352   ;;  %vm1159_vm10 = vcmask 261120  }
   0xe   : > { %s1700_s25 = smov 16   ;;  %s1701_s26 = smov 24   ;;  %vm1212_vm11 = vcmask 293888  }
   0xf   : > { %s1669_s18 = smul.u32 216, %s190_s17  ;;  %s1702_s27 = smov 20  }
  0x10   : > { %s1703_s28 = smov 28   ;;  %s1704_s29 = smov 32  }
  0x11   : > { %s1745_s21 = scalar_lea.vmem %s2644_s0, %s1669_s18  ;;  %s1538_s10 = sshll.u32 %s1736_s16, 4 }
  0x12   : > { %v1748_v0 = vld [vmem:[%s1745_s21 + $0x30] sm:$0xff]  ;;  %v216_v1 = vld [vmem:[%s1745_s21 + $0x38] sm:$0x1]  ;;  %v210_v4 = vld [vmem:[%s1745_s21 + $0x20] sm:$0x1]  ;;  %p195_p4 = scmp.lt.s32.totalorder %s1538_s10, 31 }
  0x13   : > { %v1752_v2 = vld [vmem:[%s1745_s21 + $0x18] sm:$0xff]  ;;  %v356_v3 = vunpack.c.l.b16 %v216_v1  ;;  %v1756_v5 = vld [vmem:[%s1745_s21] sm:$0xff]  ;;  %v204_v6 = vld [vmem:[%s1745_s21 + $0x8] sm:$0x1]  ;;  %v434_v7 = vshrl.u32 %v1748_v0, 16  ;;  %v436_v8 = vshll.u32 %v1748_v0, 16  ;;  %v354_v9 = vunpack.c.l.b16 %v210_v4 }
  0x14   : > { %v410_v10 = vshrl.u32 %v1752_v2, 16  ;;  %v219_v11 = vld [vmem:[%s1745_s21 + $0x44] sm:$0x1]  ;;  %v412_v13 = vshll.u32 %v1752_v2, 16  ;;  %v352_v14 = vunpack.c.l.b16 %v204_v6  ;;  %v386_v15 = vshrl.u32 %v1756_v5, 16  ;;  %v1768_v16 = vld [vmem:[%s1745_s21 + $0x3c] sm:$0xff] }
  0x15   : > { %v1763_v12 = vpack.c.b16 %v356_v3, %v356_v3  ;;  %v438_v17 = vrot.slane %v436_v8, 1  ;;  %v1770_v18 = vpack.c.b16 %v354_v9, %v354_v9  ;;  %v388_v19 = vshll.u32 %v1756_v5, 16  ;;  %v213_v25 = vld [vmem:[%s1745_s21 + $0x2c] sm:$0x1]  ;;  %v1782_v30 = vld [vmem:[%s1745_s21 + $0x24] sm:$0xff]  ;;  %v1815_v59 = vld [vmem:[%s1745_s21 + $0x54] sm:$0xff] }
  0x16   : > { %v357_v20 = vunpack.c.l.b16 %v219_v11  ;;  %v414_v22 = vrot.slane %v412_v13, 1  ;;  %v1774_v23 = vpack.c.b16 %v352_v14, %v352_v14  ;;  %v446_v24 = vshrl.u32 %v1768_v16, 16  ;;  %v1788_v39 = vld [vmem:[%s1745_s21 + $0xc] sm:$0xff]  ;;  %v207_v40 = vld [vmem:[%s1745_s21 + $0x14] sm:$0x1]  ;;  %v1796_v45 = vld [vmem:[%s1745_s21 + $0x60] sm:$0xff] }
  0x17   : > { %v441_v21 = vshll.u32 %v1763_v12, 16  ;;  %v439_v26 = vor.u32 %v438_v17, %v434_v7  ;;  %v417_v27 = vshll.u32 %v1770_v18, 16  ;;  %v390_v28 = vrot.slane %v388_v19, 1  ;;  %v228_v46 = vld [vmem:[%s1745_s21 + $0x68] sm:$0x1]  ;;  %s2662_s10 = smov (!%p195_p4, %s1538_s10), 31 }
  0x18   : > { %v1779_v29 = vpack.c.b16 %v357_v20, %v357_v20  ;;  %v415_v32 = vor.u32 %v414_v22, %v410_v10  ;;  %v393_v33 = vshll.u32 %v1774_v23, 16  ;;  %v448_v34 = vshll.u32 %v1768_v16, 16  ;;  %v225_v60 = vld [vmem:[%s1745_s21 + $0x5c] sm:$0x1]  ;;  %v1828_v8 = vld [vmem:[%s1745_s21 + $0x48] sm:$0xff]  ;;  %s1639_s16 = sshll.u32 %s2662_s10, 4 }
  0x19   : > { %v443_v31 = vrot.slane %v441_v21, 1  ;;  %v419_v35 = vrot.slane %v417_v27, 1  ;;  %v391_v36 = vor.u32 %v390_v28, %v386_v15  ;;  %v355_v38 = vunpack.c.l.b16 %v213_v25  ;;  %v222_v9 = vld [vmem:[%s1745_s21 + $0x50] sm:$0x1]  ;;  %v237_v21 = vld [vmem:[%s1745_s21 + $0x8c] sm:$0x1]  ;;  %s2518_s19 = scalar_lea.vmem %s2648_s4, %s1639_s16 }
  0x1a   : > { %v453_v37 = vshll.u32 %v1779_v29, 16  ;;  %v395_v42 = vrot.slane %v393_v33, 1  ;;  %v450_v43 = vrot.slane %v448_v34, 1  ;;  %v422_v44 = vshrl.u32 %v1782_v30, 16  ;;  %v1842_v27 = vld [vmem:[%s1745_s21 + $0x84] sm:$0xff]  ;;  %v1849_v34 = vld [vmem:[%s1745_s21 + $0x78] sm:$0xff] }
  0x1b   : > { %v1792_v41 = vsel %vm384_vm0, %v439_v26, %v443_v31  ;;  %v1802_v47 = vsel %vm384_vm0, %v415_v32, %v419_v35  ;;  %v1804_v49 = vpack.c.b16 %v355_v38, %v355_v38  ;;  %v424_v50 = vshll.u32 %v1782_v30, 16 }
  0x1c   : > { %585 = vrot.lane.b32.xlu2 %v1792_v41, %s1697_s22  ;;  %v455_v48 = vrot.slane %v453_v37, 1  ;;  %581 = vrot.lane.b32.xlu1 %v1802_v47, %s1697_s22  ;;  %v396_v51 = vsel %vm384_vm0, %v391_v36, %v395_v42  ;;  %v451_v52 = vor.u32 %v450_v43, %v446_v24  ;;  %v353_v53 = vunpack.c.l.b16 %v207_v40  ;;  %v234_v40 = vld [vmem:[%s1745_s21 + $0x80] sm:$0x1] }
  0x1d   : > { %v398_v54 = vshrl.u32 %v1788_v39, 16  ;;  %577 = vrot.lane.b32.xlu0 %v396_v51, %s1697_s22  ;;  %v426_v55 = vrot.slane %v424_v50, 1  ;;  %v429_v56 = vshll.u32 %v1804_v49, 16  ;;  %v400_v57 = vshll.u32 %v1788_v39, 16 }
  0x1e   : > { %v360_v58 = vunpack.c.l.b16 %v228_v46  ;;  %v1819_v61 = vsel %vm384_vm0, %v451_v52, %v455_v48  ;;  %v1821_v62 = vpack.c.b16 %v353_v53, %v353_v53  ;;  %v482_v63 = vshrl.u32 %v1796_v45, 16  ;;  %v1868_v52 = vld [vmem:[%s1745_s21 + $0x6c] sm:$0xff]  ;;  %v231_v53 = vld [vmem:[%s1745_s21 + $0x74] sm:$0x1] }
  0x1f   : > { %2653 = vst [vmem:[#allocation2_spill] sm:$0xff] %v1819_v61  ;;  %v484_v1 = vshll.u32 %v1796_v45, 16  ;;  %v427_v3 = vor.u32 %v426_v55, %v422_v44  ;;  %v431_v4 = vrot.slane %v429_v56, 1  ;;  %v402_v6 = vrot.slane %v400_v57, 1 }
  0x20   : > { %v1825_v7 = vpack.c.b16 %v360_v58, %v360_v58  ;;  %v405_v10 = vshll.u32 %v1821_v62, 16  ;;  %v359_v13 = vunpack.c.l.b16 %v225_v60  ;;  %v470_v14 = vshrl.u32 %v1815_v59, 16  ;;  %v1876_v58 = vld [vmem:[%s1745_s21 + $0xa8] sm:$0xff] }
  0x21   : > { %v486_v11 = vrot.slane %v484_v1, 1  ;;  %v1834_v15 = vsel %vm384_vm0, %v427_v3, %v431_v4  ;;  %v403_v17 = vor.u32 %v402_v6, %v398_v54  ;;  %v472_v20 = vshll.u32 %v1815_v59, 16  ;;  %v246_v4 = vld [vmem:[%s1745_s21 + $0xb0] sm:$0x1] }
  0x22   : > { %v489_v19 = vshll.u32 %v1825_v7, 16  ;;  %v407_v22 = vrot.slane %v405_v10, 1  ;;  %v1839_v25 = vpack.c.b16 %v359_v13, %v359_v13  ;;  %v358_v26 = vunpack.c.l.b16 %v222_v9 }
  0x23   : > { %v487_v24 = vor.u32 %v486_v11, %v482_v63  ;;  %v474_v31 = vrot.slane %v472_v20, 1  ;;  %v458_v32 = vshrl.u32 %v1828_v8, 16  ;;  %v460_v33 = vshll.u32 %v1828_v8, 16  ;;  %v1892_v20 = vld [vmem:[%s1745_s21 + $0x9c] sm:$0xff] }
  0x24   : > { %587 = vrot.lane.b32.xlu2 %v1819_v61, %s1697_s22  ;;  %v491_v28 = vrot.slane %v489_v19, 1  ;;  %583 = vrot.lane.b32.xlu1 %v1834_v15, %s1697_s22  ;;  %v1854_v35 = vsel %vm384_vm0, %v403_v17, %v407_v22  ;;  %v477_v36 = vshll.u32 %v1839_v25, 16  ;;  %v1857_v37 = vpack.c.b16 %v358_v26, %v358_v26 }
  0x25   : > { %v363_v38 = vunpack.c.l.b16 %v237_v21  ;;  %579 = vrot.lane.b32.xlu0 %v1854_v35, %s1697_s22  ;;  %v475_v42 = vor.u32 %v474_v31, %v470_v14  ;;  %v462_v43 = vrot.slane %v460_v33, 1  ;;  %v518_v44 = vshrl.u32 %v1842_v27, 16  ;;  %v243_v21 = vld [vmem:[%s1745_s21 + $0xa4] sm:$0x1] }
  0x26   : > { %v479_v46 = vrot.slane %v477_v36, 1  ;;  %v465_v48 = vshll.u32 %v1857_v37, 16  ;;  %v520_v51 = vshll.u32 %v1842_v27, 16  ;;  %v1872_v54 = vsel %vm384_vm0, %v487_v24, %v491_v28 }
  0x27   : > { %v1864_v50 = vpack.c.b16 %v363_v38, %v363_v38  ;;  %v463_v55 = vor.u32 %v462_v43, %v458_v32  ;;  %v362_v56 = vunpack.c.l.b16 %v234_v40  ;;  %v508_v57 = vshll.u32 %v1849_v34, 16  ;;  %v1909_v43 = vld [vmem:[%s1745_s21 + $0x90] sm:$0xff] }
  0x28   : > { %v467_v60 = vrot.slane %v465_v48, 1  ;;  %v522_v63 = vrot.slane %v520_v51, 1  ;;  %v506_v3 = vshrl.u32 %v1849_v34, 16  ;;  %v1882_v6 = vsel %vm384_vm0, %v475_v42, %v479_v46 }
  0x29   : > { %v525_v1 = vshll.u32 %v1864_v50, 16  ;;  %v1884_v9 = vpack.c.b16 %v362_v56, %v362_v56  ;;  %v510_v10 = vrot.slane %v508_v57, 1  ;;  %v361_v11 = vunpack.c.l.b16 %v231_v53 }
  0x2a   : > { %v1887_v13 = vsel %vm384_vm0, %v463_v55, %v467_v60  ;;  %v523_v14 = vor.u32 %v522_v63, %v518_v44  ;;  %v494_v17 = vshrl.u32 %v1868_v52, 16  ;;  %v496_v19 = vshll.u32 %v1868_v52, 16  ;;  %v240_v44 = vld [vmem:[%s1745_s21 + $0x98] sm:$0x1] }
  0x2b   : > { %v527_v22 = vrot.slane %v525_v1, 1  ;;  %v513_v24 = vshll.u32 %v1884_v9, 16  ;;  %v1898_v26 = vpack.c.b16 %v361_v11, %v361_v11  ;;  %v366_v28 = vunpack.c.l.b16 %v246_v4 }
  0x2c   : > { %593 = vrot.lane.b32.xlu2 %v1872_v54, %s1697_s22  ;;  %591 = vrot.lane.b32.xlu1 %v1882_v6, %s1697_s22  ;;  %v511_v31 = vor.u32 %v510_v10, %v506_v3  ;;  %v498_v32 = vrot.slane %v496_v19, 1  ;;  %v556_v33 = vshll.u32 %v1876_v58, 16  ;;  %v365_v42 = vunpack.c.l.b16 %v243_v21 }
  0x2d   : > { %589 = vrot.lane.b32.xlu0 %v1887_v13, %s1697_s22  ;;  %v515_v36 = vrot.slane %v513_v24, 1  ;;  %v501_v38 = vshll.u32 %v1898_v26, 16  ;;  %v1906_v40 = vpack.c.b16 %v366_v28, %v366_v28  ;;  %v544_v48 = vshll.u32 %v1892_v20, 16 }
  0x2e   : > { %v499_v46 = vor.u32 %v498_v32, %v494_v17  ;;  %v1914_v51 = vsel %vm384_vm0, %v523_v14, %v527_v22  ;;  %v554_v55 = vshrl.u32 %v1876_v58, 16  ;;  %v1917_v56 = vpack.c.b16 %v365_v42, %v365_v42  ;;  %v249_v14 = vld [vmem:[%s1745_s21 + $0xbc] sm:$0x1]  ;;  %v1934_v22 = vld [vmem:[%s1745_s21 + $0xb4] sm:$0xff] }
  0x2f   : > { %v503_v53 = vrot.slane %v501_v38, 1  ;;  %v558_v57 = vrot.slane %v556_v33, 1  ;;  %v561_v60 = vshll.u32 %v1906_v40, 16  ;;  %v542_v63 = vshrl.u32 %v1892_v20, 16 }
  0x30   : > { %v364_v1 = vunpack.c.l.b16 %v240_v44  ;;  %v1922_v3 = vsel %vm384_vm0, %v511_v31, %v515_v36  ;;  %v546_v4 = vrot.slane %v544_v48, 1  ;;  %v549_v10 = vshll.u32 %v1917_v56, 16 }
  0x31   : > { %v532_v11 = vshll.u32 %v1909_v43, 16  ;;  %v1928_v17 = vsel %vm384_vm0, %v499_v46, %v503_v53  ;;  %v530_v21 = vshrl.u32 %v1909_v43, 16  ;;  %v559_v28 = vor.u32 %v558_v57, %v554_v55 }
  0x32   : > { %2654 = vst [vmem:[#allocation3_spill] sm:$0xff] %v1928_v17  ;;  %v1930_v19 = vpack.c.b16 %v364_v1, %v364_v1  ;;  %v563_v31 = vrot.slane %v561_v60, 1  ;;  %v367_v33 = vunpack.c.l.b16 %v249_v14  ;;  %v547_v36 = vor.u32 %v546_v4, %v542_v63 }
  0x33   : > { %v534_v24 = vrot.slane %v532_v11, 1  ;;  %v551_v38 = vrot.slane %v549_v10, 1  ;;  %v568_v48 = vshll.u32 %v1934_v22, 16  ;;  %v566_v60 = vshrl.u32 %v1934_v22, 16 }
  0x34   : > { %599 = vrot.lane.b32.xlu2 %v1914_v51, %s1697_s22  ;;  %597 = vrot.lane.b32.xlu1 %v1922_v3, %s1697_s22  ;;  %v537_v32 = vshll.u32 %v1930_v19, 16  ;;  %v1943_v46 = vpack.c.b16 %v367_v33, %v367_v33  ;;  %v1947_v53 = vsel %vm384_vm0, %v559_v28, %v563_v31  ;;  %v613_v4 = vrot.slane %v1788_v39, 1 }
  0x35   : > { %595 = vrot.lane.b32.xlu0 %v1928_v17, %s1697_s22  ;;  %v535_v42 = vor.u32 %v534_v24, %v530_v21  ;;  %v1950_v55 = vsel %vm384_vm0, %v547_v36, %v551_v38  ;;  %v570_v1 = vrot.slane %v568_v48, 1  ;;  %v614_v10 = vrot.slane %v1821_v62, 1 }
  0x36   : > { %v539_v44 = vrot.slane %v537_v32, 1  ;;  %v573_v63 = vshll.u32 %v1943_v46, 16  ;;  %v610_v11 = vrot.slane %v1756_v5, 1  ;;  %v611_v14 = vrot.slane %v1774_v23, 1 }
  0x37   : > { %v571_v21 = vor.u32 %v570_v1, %v566_v60  ;;  %v1968_v28 = vsel %vm609_vm1, %v613_v4, %v614_v10  ;;  %v622_v62 = vrot.slane %v1748_v0, 1  ;;  %v623_v23 = vrot.slane %v1763_v12, 1 }
  0x38   : > { %v1953_v57 = vsel %vm384_vm0, %v535_v42, %v539_v44  ;;  %v575_v24 = vrot.slane %v573_v63, 1  ;;  %v612_v31 = vsel %vm609_vm1, %v610_v11, %v611_v14  ;;  %v619_v33 = vrot.slane %v1782_v30, 1 }
  0x39   : > { %v620_v36 = vrot.slane %v1804_v49, 1  ;;  %v616_v38 = vrot.slane %v1752_v2, 1  ;;  %v617_v42 = vrot.slane %v1770_v18, 1  ;;  %v1986_v44 = vsel %vm609_vm1, %v622_v62, %v623_v23 }
  0x3a   : > { %v1972_v32 = vsel %vm384_vm0, %v571_v21, %v575_v24  ;;  %v631_v12 = vrot.slane %v1815_v59, 1  ;;  %v632_v49 = vrot.slane %v1839_v25, 1  ;;  %v628_v18 = vrot.slane %v1828_v8, 1 }
  0x3b   : > { %v1989_v48 = vsel %vm609_vm1, %v619_v33, %v620_v36  ;;  %v1992_v60 = vsel %vm609_vm1, %v616_v38, %v617_v42  ;;  %v629_v1 = vrot.slane %v1857_v37, 1  ;;  %v625_v63 = vrot.slane %v1768_v16, 1 }
  0x3c   : > { %605 = vrot.lane.b32.xlu2 %v1947_v53, %s1697_s22  ;;  %603 = vrot.lane.b32.xlu1 %v1950_v55, %s1697_s22  ;;  %v626_v4 = vrot.slane %v1779_v29, 1  ;;  %v2007_v10 = vsel %vm609_vm1, %v631_v12, %v632_v49  ;;  %v640_v25 = vrot.slane %v1849_v34, 1  ;;  %v641_v37 = vrot.slane %v1884_v9, 1 }
  0x3d   : > { %601 = vrot.lane.b32.xlu0 %v1953_v57, %s1697_s22  ;;  %v2010_v11 = vsel %vm609_vm1, %v628_v18, %v629_v1  ;;  %v637_v29 = vrot.slane %v1868_v52, 1  ;;  %v638_v21 = vrot.slane %v1898_v26, 1  ;;  %v634_v24 = vrot.slane %v1796_v45, 1 }
  0x3e   : > { %v2013_v14 = vsel %vm609_vm1, %v625_v63, %v626_v4  ;;  %v2028_v62 = vsel %vm609_vm1, %v640_v25, %v641_v37  ;;  %v649_v9 = vrot.slane %v1892_v20, 1  ;;  %v650_v26 = vrot.slane %v1917_v56, 1 }
  0x3f   : > { %2655 = vst [vmem:[#allocation4_spill] sm:$0xff] %v2013_v14  ;;  %v2031_v23 = vsel %vm609_vm1, %v637_v29, %v638_v21  ;;  %v647_v36 = vrot.slane %v1930_v19, 1  ;;  %v643_v38 = vrot.slane %v1842_v27, 1  ;;  %v644_v42 = vrot.slane %v1864_v50, 1 }
  0x40   : > { %2656 = vst [vmem:[#allocation5_spill] sm:$0xff] %v2031_v23  ;;  %v2049_v12 = vsel %vm609_vm1, %v649_v9, %v650_v26  ;;  %v655_v50 = vrot.slane %v1934_v22, 1  ;;  %v656_v56 = vrot.slane %v1943_v46, 1  ;;  %v652_v19 = vrot.slane %v1876_v58, 1 }
  0x41   : > { %v2055_v18 = vsel %vm609_vm1, %v643_v38, %v644_v42  ;;  %v653_v1 = vrot.slane %v1906_v40, 1 }
  0x42   : > { %v2068_v63 = vsel %vm609_vm1, %v655_v50, %v656_v56 }
  0x43   : > { %v2071_v4 = vsel %vm609_vm1, %v652_v19, %v653_v1 }
  0x44   : > { %660 = vrot.lane.b32.xlu2 %v1968_v28, %s1698_s23  ;;  %658 = vrot.lane.b32.xlu1 %v612_v31, %s1698_s23  ;;  %v635_v31 = vrot.slane %v1825_v7, 1  ;;  %v646_v7 = vrot.slane %v1909_v43, 1 }
  0x45   : > { %607 = vrot.lane.b32.xlu0 %v1972_v32, %s1697_s22 }
  0x46   : > { %v2034_v33 = vsel %vm609_vm1, %v634_v24, %v635_v31  ;;  %v2052_v49 = vsel %vm609_vm1, %v646_v7, %v647_v36  ;;  %v2097_v24 = vld [vmem:[%s1745_s21 + $0xc0] sm:$0xff] }
  0x4c   : > { %666 = vrot.lane.b32.xlu2 %v1986_v44, %s1698_s23  ;;  %664 = vrot.lane.b32.xlu1 %v1989_v48, %s1698_s23 }
  0x4d   : > { %662 = vrot.lane.b32.xlu0 %v1992_v60, %s1698_s23 }
  0x54   : > { %672 = vrot.lane.b32.xlu2 %v2007_v10, %s1698_s23  ;;  %670 = vrot.lane.b32.xlu1 %v2010_v11, %s1698_s23 }
  0x55   : > { %668 = vrot.lane.b32.xlu0 %v2013_v14, %s1698_s23 }
  0x5c   : > { %678 = vrot.lane.b32.xlu2 %v2028_v62, %s1698_s23  ;;  %676 = vrot.lane.b32.xlu1 %v2031_v23, %s1698_s23 }
  0x5d   : > { %674 = vrot.lane.b32.xlu0 %v2034_v33, %s1698_s23 }
  0x64   : > { %684 = vrot.lane.b32.xlu2 %v2049_v12, %s1698_s23  ;;  %682 = vrot.lane.b32.xlu1 %v2052_v49, %s1698_s23 }
  0x65   : > { %680 = vrot.lane.b32.xlu0 %v2055_v18, %s1698_s23 }
  0x6c   : > { %695 = vrot.lane.b32.xlu2 %v1788_v39, %s1699_s24  ;;  %688 = vrot.lane.b32.xlu1 %v2068_v63, %s1698_s23 }
  0x6d   : > { %686 = vrot.lane.b32.xlu0 %v2071_v4, %s1698_s23 }
  0x74   : > { %701 = vrot.lane.b32.xlu2 %v1748_v0, %s1699_s24  ;;  %699 = vrot.lane.b32.xlu1 %v1782_v30, %s1699_s24 }
  0x75   : > { %697 = vrot.lane.b32.xlu0 %v1752_v2, %s1699_s24 }
  0x76   : > { %v586_v40 = vpop.permute.xlu2 %585 }
  0x7c   : > { %707 = vrot.lane.b32.xlu2 %v1815_v59, %s1699_s24  ;;  %705 = vrot.lane.b32.xlu1 %v1828_v8, %s1699_s24 }
  0x7d   : > { %703 = vrot.lane.b32.xlu0 %v1768_v16, %s1699_s24 }
  0x7e   : > { %v2084_v46 = vpop.permute.xlu2 %587 }
  0x84   : > { %713 = vrot.lane.b32.xlu2 %v1849_v34, %s1699_s24  ;;  %711 = vrot.lane.b32.xlu1 %v1868_v52, %s1699_s24 }
  0x85   : > { %709 = vrot.lane.b32.xlu0 %v1796_v45, %s1699_s24 }
  0x86   : > { %v2089_v25 = vpop.permute.xlu2 %593 }
  0x8c   : > { %719 = vrot.lane.b32.xlu2 %v1892_v20, %s1699_s24  ;;  %717 = vrot.lane.b32.xlu1 %v1909_v43, %s1699_s24 }
  0x8d   : > { %715 = vrot.lane.b32.xlu0 %v1842_v27, %s1699_s24 }
  0x8e   : > { %v2094_v37 = vpop.permute.xlu2 %599  ;;  %v582_v29 = vpop.permute.xlu1 %581 }
  0x8f   : > { %v578_v21 = vpop.permute.xlu0 %577 }
  0x94   : > { %725 = vrot.lane.b32.xlu2 %v2097_v24, %s1699_s24  ;;  %723 = vrot.lane.b32.xlu1 %v1934_v22, %s1699_s24 }
  0x95   : > { %721 = vrot.lane.b32.xlu0 %v1876_v58, %s1699_s24 }
  0x96   : > { %v2102_v31 = vpop.permute.xlu2 %605  ;;  %v584_v9 = vpop.permute.xlu1 %583 }
  0x97   : > { %v580_v26 = vpop.permute.xlu0 %579 }
  0x98   : > { %v932_v7 = vsel %vm928_vm3, %v1788_v39, %v580_v26  ;;  %v938_v39 = vsel %vm928_vm3, %v1748_v0, %v586_v40 }
  0x9c   : > { %766 = vrot.lane.b32.xlu2 %v1950_v55, %s1700_s25  ;;  %758 = vrot.lane.b32.xlu1 %v1928_v17, %s1700_s25 }
  0x9d   : > { %742 = vrot.lane.b32.xlu0 %v1854_v35, %s1700_s25 }
  0x9e   : > { %v661_v36 = vpop.permute.xlu2 %660  ;;  %v592_v38 = vpop.permute.xlu1 %591 }
  0x9f   : > { %v2113_v42 = vsel %vm961_vm2, %v932_v7, %v661_v36  ;;  %v590_v50 = vpop.permute.xlu0 %589  ;;  %v944_v26 = vsel %vm928_vm3, %v1815_v59, %v592_v38 }
  0xa4   : > { %830 = vrot.lane.b32.xlu2 %v1849_v34, %s1701_s26  ;;  %801 = vrot.lane.b32.xlu1 %v2049_v12, %s1702_s27 }
  0xa5   : > { %793 = vrot.lane.b32.xlu0 %v2031_v23, %s1702_s27  ;;  %v930_v23 = vsel %vm928_vm3, %v1756_v5, %v578_v21  ;;  %v936_v21 = vsel %vm928_vm3, %v1782_v30, %v584_v9  ;;  %v942_v9 = vsel %vm928_vm3, %v1828_v8, %v590_v50  ;;  %v946_v50 = vsel %vm928_vm3, %v1796_v45, %v2089_v25 }
  0xa6   : > { %v667_v35 = vpop.permute.xlu2 %666  ;;  %v598_v56 = vpop.permute.xlu1 %597 }
  0xa7   : > { %v2124_v19 = vsel %vm961_vm2, %v938_v39, %v667_v35  ;;  %v596_v1 = vpop.permute.xlu0 %595  ;;  %v950_v35 = vsel %vm928_vm3, %v1849_v34, %v598_v56 }
  0xac   : > { %885 = vrot.lane.b32.xlu2 %v1947_v53, %s1703_s28  ;;  %877 = vrot.lane.b32.xlu1 %v1922_v3, %s1703_s28 }
  0xad   : > { %838 = vrot.lane.b32.xlu0 %v1876_v58, %s1701_s26 }
  0xae   : > { %v673_v40 = vpop.permute.xlu2 %672  ;;  %v604_v7 = vpop.permute.xlu1 %603 }
  0xaf   : > { %v2135_v36 = vsel %vm961_vm2, %v944_v26, %v673_v40  ;;  %v602_v39 = vpop.permute.xlu0 %601  ;;  %v956_v34 = vsel %vm928_vm3, %v1892_v20, %v604_v7  ;;  %v940_v7 = vsel %vm928_vm3, %v1768_v16, %v2084_v46 }
  0xb4   : > { %750 = vrot.lane.b32.xlu2 %v1819_v61, %s1700_s25  ;;  %920 = vrot.lane.b32.xlu1 %v2071_v4, %s1704_s29 }
  0xb5   : > { %912 = vrot.lane.b32.xlu0 %v2028_v62, %s1704_s29 }
  0xb6   : > { %v679_v38 = vpop.permute.xlu2 %678  ;;  %v659_v40 = vpop.permute.xlu1 %658 }
  0xb7   : > { %v2148_v26 = vsel %vm961_vm2, %v950_v35, %v679_v38  ;;  %v963_v61 = vsel %vm961_vm2, %v930_v23, %v659_v40  ;;  %v608_v17 = vpop.permute.xlu0 %607  ;;  %v934_v35 = vsel %vm928_vm3, %v1752_v2, %v582_v29 }
  0xbc   : > { %814 = vrot.lane.b32.xlu2 %v1752_v2, %s1701_s26  ;;  %785 = vrot.lane.b32.xlu1 %v2013_v14, %s1702_s27 }
  0xbd   : > { %777 = vrot.lane.b32.xlu0 %v1968_v28, %s1702_s27 }
  0xbe   : > { %v685_v5 = vpop.permute.xlu2 %684  ;;  %v665_v23 = vpop.permute.xlu1 %664 }
  0xbf   : > { %v2162_v56 = vsel %vm961_vm2, %v956_v34, %v685_v5  ;;  %v969_v38 = vsel %vm961_vm2, %v936_v21, %v665_v23  ;;  %v663_v40 = vpop.permute.xlu0 %662 }
  0xc0   : > { %v967_v14 = vsel %vm961_vm2, %v934_v35, %v663_v40 }
  0xc4   : > { %869 = vrot.lane.b32.xlu2 %v1887_v13, %s1703_s28  ;;  %861 = vrot.lane.b32.xlu1 %v1802_v47, %s1703_s28 }
  0xc5   : > { %822 = vrot.lane.b32.xlu0 %v1828_v8, %s1701_s26  ;;  %v948_v8 = vsel %vm928_vm3, %v1868_v52, %v596_v1 }
  0xc6   : > { %v696_v28 = vpop.permute.xlu2 %695  ;;  %v671_v29 = vpop.permute.xlu1 %670 }
  0xc7   : > { %v2177_v2 = vsel %vm994_vm4, %v963_v61, %v696_v28  ;;  %v975_v34 = vsel %vm961_vm2, %v942_v9, %v671_v29  ;;  %v669_v5 = vpop.permute.xlu0 %668  ;;  %v952_v28 = vsel %vm928_vm3, %v1842_v27, %v2094_v37 }
  0xc8   : > { %v973_v21 = vsel %vm961_vm2, %v940_v7, %v669_v5  ;;  %v958_v7 = vsel %vm928_vm3, %v1876_v58, %v2102_v31 }
  0xcc   : > { %760 = vrot.lane.b32.xlu2 %v1922_v3, %s1700_s25  ;;  %904 = vrot.lane.b32.xlu1 %v2010_v11, %s1704_s29 }
  0xcd   : > { %896 = vrot.lane.b32.xlu0 %v1992_v60, %s1704_s29 }
  0xce   : > { %v702_v61 = vpop.permute.xlu2 %701  ;;  %v677_v46 = vpop.permute.xlu1 %676 }
  0xcf   : > { %v2193_v16 = vsel %vm994_vm4, %v969_v38, %v702_v61  ;;  %v981_v3 = vsel %vm961_vm2, %v948_v8, %v677_v46  ;;  %v675_v23 = vpop.permute.xlu0 %674  ;;  %v954_v38 = vsel %vm928_vm3, %v1909_v43, %v602_v39  ;;  %v960_v39 = vsel %vm928_vm3, %v1934_v22, %v608_v17 }
  0xd0   : > { %v2200_v35 = vsel %vm961_vm2, %v946_v50, %v675_v23 }
  0xd4   : > { %803 = vrot.lane.b32.xlu2 %v2071_v4, %s1702_s27  ;;  %795 = vrot.lane.b32.xlu1 %v2028_v62, %s1702_s27 }
  0xd5   : > { %768 = vrot.lane.b32.xlu0 %v1947_v53, %s1700_s25 }
  0xd6   : > { %v708_v1 = vpop.permute.xlu2 %707  ;;  %v683_v40 = vpop.permute.xlu1 %682 }
  0xd7   : > { %v2211_v25 = vsel %vm994_vm4, %v975_v34, %v708_v1  ;;  %v2217_v4 = vsel %vm961_vm2, %v954_v38, %v683_v40  ;;  %v681_v9 = vpop.permute.xlu0 %680 }
  0xd8   : > { %v985_v62 = vsel %vm961_vm2, %v952_v28, %v681_v9 }
  0xdc   : > { %879 = vrot.lane.b32.xlu2 %v1914_v51, %s1703_s28  ;;  %840 = vrot.lane.b32.xlu1 %v1934_v22, %s1701_s26 }
  0xdd   : > { %832 = vrot.lane.b32.xlu0 %v1842_v27, %s1701_s26 }
  0xde   : > { %v714_v53 = vpop.permute.xlu2 %713  ;;  %v689_v29 = vpop.permute.xlu1 %688 }
  0xdf   : > { %v2229_v37 = vsel %vm994_vm4, %v981_v3, %v714_v53  ;;  %v993_v34 = vsel %vm961_vm2, %v960_v39, %v689_v29  ;;  %v687_v5 = vpop.permute.xlu0 %686  ;;  %v1659_v53 = vld [vmem:[%s2645_s1 + $0x8] sm:$0xff]  ;;  %v733_v39 = vshll.u32 %v2097_v24, 16 }
  0xe0   : > { %v991_v61 = vsel %vm961_vm2, %v958_v7, %v687_v5  ;;  %v731_v5 = vshrl.u32 %v2097_v24, 16 }
  0xe4   : > { %922 = vrot.lane.b32.xlu2 %v2068_v63, %s1704_s29  ;;  %914 = vrot.lane.b32.xlu1 %v2055_v18, %s1704_s29 }
  0xe5   : > { %887 = vrot.lane.b32.xlu0 %v1972_v32, %s1703_s28 }
  0xe6   : > { %v2242_v27 = vpop.permute.xlu2 %719  ;;  %v700_v17 = vpop.permute.xlu1 %699 }
  0xe7   : > { %v2245_v22 = vsel %vm994_vm4, %v967_v14, %v700_v17  ;;  %v698_v58 = vpop.permute.xlu0 %697  ;;  %v735_v17 = vrot.slane %v733_v39, 1 }
  0xe8   : > { %v2249_v31 = vsel %vm994_vm4, %v2113_v42, %v698_v58 }
  0xec   : > { %779 = vrot.lane.b32.xlu2 %v1992_v60, %s1702_s27  ;;  %752 = vrot.lane.b32.xlu1 %v1887_v13, %s1700_s25 }
  0xed   : > { %744 = vrot.lane.b32.xlu0 %v1802_v47, %s1700_s25 }
  0xee   : > { %v726_v8 = vpop.permute.xlu2 %725  ;;  %v706_v14 = vpop.permute.xlu1 %705 }
  0xef   : > { %v2258_v46 = vsel %vm994_vm4, %v993_v34, %v726_v8  ;;  %v2261_v50 = vsel %vm994_vm4, %v973_v21, %v706_v14  ;;  %v704_v3 = vpop.permute.xlu0 %703  ;;  %v736_v8 = vor.u32 %v735_v17, %v731_v5  ;;  %v255_v5 = vld [vmem:[%s1745_s21 + $0xd4] sm:$0x1] }
  0xf0   : > { %v2265_v42 = vsel %vm994_vm4, %v2124_v19, %v704_v3  ;;  %v1196_v19 = vld [vmem:[%s2645_s1 + $0x10] sm:$0x3] }
  0xf4   : > { %824 = vrot.lane.b32.xlu2 %v1815_v59, %s1701_s26  ;;  %816 = vrot.lane.b32.xlu1 %v1782_v30, %s1701_s26  ;;  %v1206_v59 = vunpack.c.l.b16 %v1196_v19 }
  0xf5   : > { %787 = vrot.lane.b32.xlu0 %v2010_v11, %s1702_s27 }
  0xf6   : > { %v2273_v47 = vpop.permute.xlu2 %766  ;;  %v2275_v13 = vpop.permute.xlu1 %711  ;;  %v1209_v30 = vpack.c.b16 %v1206_v59, %v1206_v59 }
  0xf7   : > { %v710_v60 = vpop.permute.xlu0 %709 }
  0xf8   : > { %v2279_v21 = vsel %vm994_vm4, %v2135_v36, %v710_v60  ;;  %v252_v36 = vld [vmem:[%s1745_s21 + $0xc8] sm:$0x1]  ;;  %v1247_v23 = vsel %vm1245_vm5, %v1209_v30, 0 }
  0xf9   : > { %1661 = vmatpush.bf16.msra.mxu2 %v1247_v23  ;;  %1662 = vmatpush.bf16.msra.mxu3 %v1247_v23  ;;  %v728_v9 = vunpack.c.l.b16 %v252_v36 }
  0xfa   : > { %1254 = vmatpush.bf16.msra.mxu0 %v1247_v23  ;;  %1660 = vmatpush.bf16.msra.mxu1 %v1247_v23 }
  0xfc   : > { %898 = vrot.lane.b32.xlu2 %v1989_v48, %s1704_s29  ;;  %871 = vrot.lane.b32.xlu1 %v1882_v6, %s1703_s28 }
  0xfd   : > { %863 = vrot.lane.b32.xlu0 %v1834_v15, %s1703_s28  ;;  %1664 = vmatpush.bf16.msra.mxu2 %v1659_v53 }
  0xfe   : > { %v2290_v11 = vpop.permute.xlu2 %830  ;;  %v718_v1 = vpop.permute.xlu1 %717  ;;  %1665 = vmatpush.bf16.msra.mxu3 %v1659_v53  ;;  %1255 = vmatpush.bf16.msra.mxu0 %v1659_v53 }
  0xff   : > { %v2294_v38 = vsel %vm994_vm4, %v985_v62, %v718_v1  ;;  %v716_v40 = vpop.permute.xlu0 %715  ;;  %v729_v62 = vpack.c.b16 %v728_v9, %v728_v9  ;;  %1663 = vmatpush.bf16.msra.mxu1 %v1659_v53  ;;  %v1020_v1 = vsel %vm994_vm4, %v2217_v4, %v2242_v27 }
 0x100   : > { %v2298_v28 = vsel %vm994_vm4, %v2148_v26, %v716_v40  ;;  %v1658_v26 = vld [vmem:[%s2645_s1] sm:$0xff]  ;;  %v1053_v40 = vsel %vm1027_vm6, %v1020_v1, %v2273_v47 }
 0x101   : > { %1667 = vmatpush.bf16.msra.mxu2 %v1658_v26  ;;  %v738_v58 = vshll.u32 %v729_v62, 16 }
 0x102   : > { %1668 = vmatpush.bf16.msra.mxu3 %v1658_v26  ;;  %1256 = vmatpush.bf16.msra.mxu0 %v1658_v26 }
 0x103   : > { %1666 = vmatpush.bf16.msra.mxu1 %v1658_v26 }
 0x104   : > { %770 = vrot.lane.b32.xlu2 %v1972_v32, %s1700_s25  ;;  %762 = vrot.lane.b32.xlu1 %v1914_v51, %s1700_s25 }
 0x105   : > { %906 = vrot.lane.b32.xlu0 %v2007_v10, %s1704_s29 }
 0x106   : > { %v886_v29 = vpop.permute.xlu2 %885  ;;  %v724_v7 = vpop.permute.xlu1 %723 }
 0x107   : > { %v2314_v32 = vsel %vm994_vm4, %v991_v61, %v724_v7  ;;  %v722_v34 = vpop.permute.xlu0 %721  ;;  %v740_v61 = vrot.slane %v738_v58, 1  ;;  %v847_v58 = vunpack.c.l.b16 %v255_v5  ;;  %v2658_v5 = vld [vmem:[#allocation2_spill] sm:$0xff] }
 0x108   : > { %v2318_v51 = vsel %vm994_vm4, %v2162_v56, %v722_v34 }
 0x109   : > { %v2328_v60 = vsel %vm384_vm0, %v736_v8, %v740_v61 }
 0x10c   : > { %834 = vrot.lane.b32.xlu2 %v1909_v43, %s1701_s26  ;;  %805 = vrot.lane.b32.xlu1 %v2068_v63, %s1702_s27  ;;  %v774_v63 = vrot.slane %v2097_v24, 1 }
 0x10d   : > { %797 = vrot.lane.b32.xlu0 %v2055_v18, %s1702_s27  ;;  %v775_v18 = vrot.slane %v729_v62, 1 }
 0x10e   : > { %v751_v14 = vpop.permute.xlu2 %750  ;;  %v759_v3 = vpop.permute.xlu1 %758 }
 0x10f   : > { %v743_v56 = vpop.permute.xlu0 %742  ;;  %v2340_v30 = vsel %vm609_vm1, %v774_v63, %v775_v18 }
 0x110   : > { %v1029_v8 = vsel %vm1027_vm6, %v2177_v2, %v743_v56 }
 0x114   : > { %889 = vrot.lane.b32.xlu2 %v2328_v60, %s1703_s28  ;;  %881 = vrot.lane.b32.xlu1 %v1953_v57, %s1703_s28 }
 0x115   : > { %842 = vrot.lane.b32.xlu0 %v2097_v24, %s1701_s26 }
 0x116   : > { %v2336_v43 = vpop.permute.xlu2 %814  ;;  %v802_v19 = vpop.permute.xlu1 %801 }
 0x117   : > { %v794_v59 = vpop.permute.xlu0 %793  ;;  %v1086_v53 = vsel %vm1060_vm7, %v1053_v40, %v802_v19 }
 0x11c   : > { %746 = vrot.lane.b32.xlu2 %v1834_v15, %s1700_s25  ;;  %924 = vrot.lane.b32.xlu1 %v2340_v30, %s1704_s29  ;;  %v1012_v15 = vsel %vm994_vm4, %v2200_v35, %v2275_v13 }
 0x11d   : > { %916 = vrot.lane.b32.xlu0 %v2052_v49, %s1704_s29  ;;  %v1045_v9 = vsel %vm1027_vm6, %v1012_v15, %v759_v3 }
 0x11e   : > { %v870_v36 = vpop.permute.xlu2 %869  ;;  %v878_v23 = vpop.permute.xlu1 %877  ;;  %v1078_v62 = vsel %vm1060_vm7, %v1045_v9, %v794_v59 }
 0x11f   : > { %v839_v24 = vpop.permute.xlu0 %838  ;;  %v1111_v4 = vsel %vm1093_vm8, %v1078_v62, %v2290_v11 }
 0x120   : > { %v1119_v39 = vsel %vm1093_vm8, %v1086_v53, %v839_v24  ;;  %v1144_v13 = vsel %vm1126_vm9, %v1111_v4, %v878_v23 }
 0x121   : > { %v1152_v47 = vsel %vm1126_vm9, %v1119_v39, %v886_v29 }
 0x124   : > { %789 = vrot.lane.b32.xlu2 %v2007_v10, %s1702_s27  ;;  %781 = vrot.lane.b32.xlu1 %v1989_v48, %s1702_s27 }
 0x125   : > { %754 = vrot.lane.b32.xlu0 %v1882_v6, %s1700_s25 }
 0x126   : > { %v2366_v35 = vpop.permute.xlu2 %760  ;;  %v921_v27 = vpop.permute.xlu1 %920 }
 0x127   : > { %v913_v26 = vpop.permute.xlu0 %912  ;;  %v1185_v10 = vsel %vm1159_vm10, %v1152_v47, %v921_v27 }
 0x128   : > { %v1177_v48 = vsel %vm1159_vm10, %v1144_v13, %v913_v26  ;;  %1633 = vmatmul.msk.bf16.vlgmr.msra.gmra.mxu3 %vm1212_vm11, %v1185_v10 }
 0x129   : > { %1629 = vmatmul.msk.bf16.vlgmr.msra.gmra.mxu2 %vm1212_vm11, %v1177_v48 }
 0x12c   : > { %865 = vrot.lane.b32.xlu2 %v1792_v41, %s1703_s28  ;;  %826 = vrot.lane.b32.xlu1 %v1796_v45, %s1701_s26  ;;  %v1037_v45 = vsel %vm1027_vm6, %v2265_v42, %v751_v14  ;;  %v848_v14 = vpack.c.b16 %v847_v58, %v847_v58  ;;  %v2659_v58 = vld [vmem:[#allocation5_spill] sm:$0xff] }
 0x12d   : > { %818 = vrot.lane.b32.xlu0 %v1748_v0, %s1701_s26  ;;  %v1657_v0 = vld [vmem:[%s1745_s21 + $0xcc] sm:$0xff] }
 0x12e   : > { %v804_v6 = vpop.permute.xlu2 %803  ;;  %v786_v11 = vpop.permute.xlu1 %785  ;;  %v852_v18 = vshll.u32 %v1657_v0, 16  ;;  %v857_v1 = vshll.u32 %v848_v14, 16  ;;  %v894_v39 = vrot.slane %v848_v14, 1 }
 0x12f   : > { %v778_v29 = vpop.permute.xlu0 %777  ;;  %v1070_v61 = vsel %vm1060_vm7, %v1037_v45, %v786_v11 }
 0x130   : > { %v1062_v3 = vsel %vm1060_vm7, %v1029_v8, %v778_v29  ;;  %v1688_v29 = vld [vmem:[%s1745_s21 + $0x3c] sm:$0xff] }
 0x131   : > { %v1095_v2 = vsel %vm1093_vm8, %v1062_v3, %v2336_v43 }
 0x134   : > { %908 = vrot.lane.b32.xlu2 %v2034_v33, %s1704_s29  ;;  %900 = vrot.lane.b32.xlu1 %v1986_v44, %s1704_s29 }
 0x135   : > { %873 = vrot.lane.b32.xlu0 %v1872_v54, %s1703_s28 }
 0x136   : > { %v880_v7 = vpop.permute.xlu2 %879  ;;  %v862_v34 = vpop.permute.xlu1 %861 }
 0x137   : > { %v823_v17 = vpop.permute.xlu0 %822  ;;  %v1128_v59 = vsel %vm1126_vm9, %v1095_v2, %v862_v34  ;;  %v2657_v34 = vld [vmem:[#allocation3_spill] sm:$0xff] }
 0x138   : > { %v1103_v63 = vsel %vm1093_vm8, %v1070_v61, %v823_v17 }
 0x139   : > { %v1136_v19 = vsel %vm1126_vm9, %v1103_v63, %v870_v36  ;;  %v859_v36 = vrot.slane %v857_v1, 1 }
 0x13c   : > { %799 = vrot.lane.b32.xlu2 %v2052_v49, %s1702_s27  ;;  %772 = vrot.lane.b32.xlu1 %v2328_v60, %s1700_s25  ;;  %v854_v60 = vrot.slane %v852_v18, 1 }
 0x13d   : > { %764 = vrot.lane.b32.xlu0 %v1953_v57, %s1700_s25  ;;  %v850_v57 = vshrl.u32 %v1657_v0, 16 }
 0x13e   : > { %v923_v42 = vpop.permute.xlu2 %922  ;;  %v905_v56 = vpop.permute.xlu1 %904 }
 0x13f   : > { %v897_v23 = vpop.permute.xlu0 %896  ;;  %v1169_v49 = vsel %vm1159_vm10, %v1136_v19, %v905_v56  ;;  %v855_v43 = vor.u32 %v854_v60, %v850_v57 }
 0x140   : > { %v1161_v24 = vsel %vm1159_vm10, %v1128_v59, %v897_v23  ;;  %1625 = vmatmul.msk.bf16.vlgmr.msra.gmra.mxu1 %vm1212_vm11, %v1169_v49 }
 0x141   : > { %1621 = vmatmul.msk.bf16.vlgmr.msra.gmra.mxu0 %vm1212_vm11, %v1161_v24  ;;  %v860_v53 = vsel %vm384_vm0, %v855_v43, %v859_v36 }
 0x144   : > { %844 = vrot.lane.b32.xlu2 %v1657_v0, %s1701_s26  ;;  %836 = vrot.lane.b32.xlu1 %v1892_v20, %s1701_s26  ;;  %v893_v20 = vrot.slane %v1657_v0, 1 }
 0x145   : > { %807 = vrot.lane.b32.xlu0 %v2340_v30, %s1702_s27  ;;  %v1047_v30 = vsel %vm1027_vm6, %v2229_v37, %v2366_v35 }
 0x146   : > { %v796_v40 = vpop.permute.xlu1 %795  ;;  %v780_v15 = vpop.permute.xlu2 %779  ;;  %v895_v13 = vsel %vm609_vm1, %v893_v20, %v894_v39 }
 0x147   : > { %v769_v9 = vpop.permute.xlu0 %768  ;;  %v1080_v47 = vsel %vm1060_vm7, %v1047_v30, %v796_v40 }
 0x14c   : > { %918 = vrot.lane.b32.xlu2 %v2049_v12, %s1704_s29  ;;  %891 = vrot.lane.b32.xlu1 %v860_v53, %s1703_s28  ;;  %v1055_v12 = vsel %vm1027_vm6, %v2318_v51, %v769_v9 }
 0x14d   : > { %883 = vrot.lane.b32.xlu0 %v1950_v55, %s1703_s28  ;;  %v1088_v55 = vsel %vm1060_vm7, %v1055_v12, %v804_v6 }
 0x14e   : > { %v841_v62 = vpop.permute.xlu1 %840  ;;  %v825_v27 = vpop.permute.xlu2 %824 }
 0x14f   : > { %v833_v4 = vpop.permute.xlu0 %832  ;;  %v1121_v10 = vsel %vm1093_vm8, %v1088_v55, %v841_v62 }
 0x150   : > { %v1113_v26 = vsel %vm1093_vm8, %v1080_v47, %v833_v4 }
 0x151   : > { %v1146_v35 = vsel %vm1126_vm9, %v1113_v26, %v880_v7 }
 0x154   : > { %756 = vrot.lane.b32.xlu2 %v1872_v54, %s1700_s25  ;;  %748 = vrot.lane.b32.xlu1 %v1792_v41, %s1700_s25 }
 0x155   : > { %926 = vrot.lane.b32.xlu0 %v895_v13, %s1704_s29 }
 0x156   : > { %v915_v37 = vpop.permute.xlu1 %914  ;;  %v899_v41 = vpop.permute.xlu2 %898 }
 0x157   : > { %v888_v48 = vpop.permute.xlu0 %887  ;;  %v1179_v51 = vsel %vm1159_vm10, %v1146_v35, %v915_v37 }
 0x158   : > { %v1154_v11 = vsel %vm1126_vm9, %v1121_v10, %v888_v48  ;;  %1630 = vmatmul.msk.bf16.gmra.mxu2 %vm1212_vm11, %v1179_v51 }
 0x159   : > { %v1187_v54 = vsel %vm1159_vm10, %v1154_v11, %v923_v42 }
 0x15a   : > { %1634 = vmatmul.msk.bf16.gmra.mxu3 %vm1212_vm11, %v1187_v54 }
 0x15c   : > { %820 = vrot.lane.b32.xlu2 %v1688_v29, %s1701_s26  ;;  %791 = vrot.lane.b32.xlu1 %v2034_v33, %s1702_s27 }
 0x15d   : > { %783 = vrot.lane.b32.xlu0 %v1986_v44, %s1702_s27  ;;  %v2660_v44 = vld [vmem:[#allocation4_spill] sm:$0xff] }
 0x15e   : > { %v753_v6 = vpop.permute.xlu1 %752  ;;  %v771_v17 = vpop.permute.xlu2 %770 }
 0x15f   : > { %v745_v7 = vpop.permute.xlu0 %744  ;;  %v1057_v43 = vsel %vm1027_vm6, %v2314_v32, %v771_v17 }
 0x160   : > { %v1031_v33 = vsel %vm1027_vm6, %v2249_v31, %v745_v7  ;;  %v1039_v31 = vsel %vm1027_vm6, %v2261_v50, %v753_v6 }
 0x161   : > { %v1064_v8 = vsel %vm1060_vm7, %v1031_v33, %v780_v15 }
 0x164   : > { %875 = vrot.lane.b32.xlu2 %v2657_v34, %s1703_s28  ;;  %867 = vrot.lane.b32.xlu1 %v2658_v5, %s1703_s28  ;;  %v2510_v34 = vld [vmem:[%s2647_s3] ss:$0 sm:$0xff] }
 0x165   : > { %828 = vrot.lane.b32.xlu0 %v1868_v52, %s1701_s26 }
 0x166   : > { %v817_v45 = vpop.permute.xlu1 %816  ;;  %v835_v3 = vpop.permute.xlu2 %834 }
 0x167   : > { %v788_v0 = vpop.permute.xlu0 %787  ;;  %v1097_v63 = vsel %vm1093_vm8, %v1064_v8, %v817_v45 }
 0x168   : > { %v1072_v18 = vsel %vm1060_vm7, %v1039_v31, %v788_v0 }
 0x169   : > { %v1105_v2 = vsel %vm1093_vm8, %v1072_v18, %v825_v27 }
 0x16c   : > { %910 = vrot.lane.b32.xlu1 %v2659_v58, %s1704_s29 }
 0x16d   : > { %902 = vrot.lane.b32.xlu0 %v2660_v44, %s1704_s29 }
 0x16e   : > { %v872_v61 = vpop.permute.xlu1 %871  ;;  %v890_v49 = vpop.permute.xlu2 %889 }
 0x16f   : > { %v864_v42 = vpop.permute.xlu0 %863  ;;  %v1138_v19 = vsel %vm1126_vm9, %v1105_v2, %v872_v61 }
 0x170   : > { %v1130_v52 = vsel %vm1126_vm9, %v1097_v63, %v864_v42 }
 0x171   : > { %v1163_v14 = vsel %vm1159_vm10, %v1130_v52, %v899_v41 }
 0x172   : > { %1622 = vmatmul.msk.bf16.gmra.mxu0 %vm1212_vm11, %v1163_v14 }
 0x176   : > { %v763_v56 = vpop.permute.xlu1 %762  ;;  %v747_v60 = vpop.permute.xlu2 %746 }
 0x177   : > { %v907_v59 = vpop.permute.xlu0 %906  ;;  %v1049_v36 = vsel %vm1027_vm6, %v2298_v28, %v763_v56  ;;  %v1033_v55 = vsel %vm1027_vm6, %v2245_v22, %v747_v60 }
 0x178   : > { %v1171_v23 = vsel %vm1159_vm10, %v1138_v19, %v907_v59 }
 0x179   : > { %1626 = vmatmul.msk.bf16.gmra.mxu1 %vm1212_vm11, %v1171_v23 }
 0x17e   : > { %v806_v24 = vpop.permute.xlu1 %805  ;;  %v790_v53 = vpop.permute.xlu2 %789 }
 0x17f   : > { %v798_v57 = vpop.permute.xlu0 %797  ;;  %v1090_v40 = vsel %vm1060_vm7, %v1057_v43, %v806_v24 }
 0x180   : > { %v1082_v15 = vsel %vm1060_vm7, %v1049_v36, %v798_v57 }
 0x181   : > { %v1115_v62 = vsel %vm1093_vm8, %v1082_v15, %v835_v3 }
 0x186   : > { %v882_v1 = vpop.permute.xlu1 %881  ;;  %v866_v47 = vpop.permute.xlu2 %865 }
 0x187   : > { %v843_v50 = vpop.permute.xlu0 %842  ;;  %v1148_v4 = vsel %vm1126_vm9, %v1115_v62, %v882_v1 }
 0x188   : > { %v1123_v9 = vsel %vm1093_vm8, %v1090_v40, %v843_v50 }
 0x189   : > { %v1156_v39 = vsel %vm1126_vm9, %v1123_v9, %v890_v49 }
 0x18e   : > { %v925_v20 = vpop.permute.xlu1 %924  ;;  %v909_v37 = vpop.permute.xlu2 %908 }
 0x18f   : > { %v917_v30 = vpop.permute.xlu0 %916  ;;  %v1189_v32 = vsel %vm1159_vm10, %v1156_v39, %v925_v20 }
 0x190   : > { %v1181_v28 = vsel %vm1159_vm10, %v1148_v4, %v917_v30  ;;  %1635 = vmatmul.msk.bf16.gmra.mxu3 %vm1212_vm11, %v1189_v32 }
 0x191   : > { %1631 = vmatmul.msk.bf16.gmra.mxu2 %vm1212_vm11, %v1181_v28 }
 0x196   : > { %v782_v27 = vpop.permute.xlu1 %781  ;;  %v800_v5 = vpop.permute.xlu2 %799 }
 0x197   : > { %v755_v13 = vpop.permute.xlu0 %754  ;;  %v1066_v35 = vsel %vm1060_vm7, %v1033_v55, %v782_v27 }
 0x198   : > { %v1041_v10 = vsel %vm1027_vm6, %v2211_v25, %v755_v13  ;;  %v2503_v25 = vld [vmem:[%s2646_s2] ss:$0 sm:$0xff] }
 0x199   : > { %v1074_v51 = vsel %vm1060_vm7, %v1041_v10, %v790_v53 }
 0x19e   : > { %v827_v12 = vpop.permute.xlu1 %826  ;;  %v845_v31 = vpop.permute.xlu2 %844 }
 0x19f   : > { %v819_v26 = vpop.permute.xlu0 %818  ;;  %v1107_v41 = vsel %vm1093_vm8, %v1074_v51, %v827_v12 }
 0x1a0   : > { %v1099_v48 = vsel %vm1093_vm8, %v1066_v35, %v819_v26 }
 0x1a1   : > { %v1132_v54 = vsel %vm1126_vm9, %v1099_v48, %v866_v47 }
 0x1a6   : > { %v901_v11 = vpop.permute.xlu1 %900  ;;  %v919_v36 = vpop.permute.xlu2 %918 }
 0x1a7   : > { %v874_v29 = vpop.permute.xlu0 %873  ;;  %v1165_v22 = vsel %vm1159_vm10, %v1132_v54, %v901_v11 }
 0x1a8   : > { %v1140_v6 = vsel %vm1126_vm9, %v1107_v41, %v874_v29  ;;  %1623 = vmatmul.msk.bf16.gmra.mxu0 %vm1212_vm11, %v1165_v22 }
 0x1a9   : > { %v1173_v7 = vsel %vm1159_vm10, %v1140_v6, %v909_v37 }
 0x1aa   : > { %1627 = vmatmul.msk.bf16.gmra.mxu1 %vm1212_vm11, %v1173_v7 }
 0x1ab   : > { %v1318_v17 = vpop.f32.mrf.mxu3 }
 0x1ac   : > { %v1298_v45 = vpop.f32.mrf.mxu2  ;;  %v1366_v0 = vmul.f32 %v2503_v25, %v1318_v17 }
 0x1ad   : > { %v1358_v33 = vmul.f32 %v2503_v25, %v1298_v45 }
 0x1ae   : > { %v1402_v58 = vadd.f32 %v2510_v34, %v1366_v0  ;;  %v773_v44 = vpop.permute.xlu1 %772  ;;  %v757_v10 = vpop.permute.xlu2 %756 }
 0x1af   : > { %v1394_v8 = vadd.f32 %v2510_v34, %v1358_v33  ;;  %v765_v61 = vpop.permute.xlu0 %764  ;;  %v1059_v39 = vsel %vm1027_vm6, %v2258_v46, %v773_v44  ;;  %v1043_v7 = vsel %vm1027_vm6, %v2279_v21, %v757_v10 }
 0x1b0   : > { %v1434_v3 = vmax.f32 %v1402_v58, 0.0  ;;  %v1051_v24 = vsel %vm1027_vm6, %v2294_v38, %v765_v61 }
 0x1b1   : > { %v1426_v63 = vmax.f32 %v1394_v8, 0.0  ;;  %v1084_v60 = vsel %vm1060_vm7, %v1051_v24, %v800_v5 }
 0x1b2   : > { %1466 = vst [vmem:[%s2518_s19 + $0xc0] sm:$0xff] %v1434_v3 }
 0x1b3   : > { %1458 = vst [vmem:[%s2518_s19 + $0x80] sm:$0xff] %v1426_v63  ;;  %v1320_v42 = vpop.f32.mrf.mxu3 }
 0x1b4   : > { %v1300_v52 = vpop.f32.mrf.mxu2  ;;  %v1367_v14 = vmul.f32 %v2503_v25, %v1320_v42 }
 0x1b5   : > { %v1359_v18 = vmul.f32 %v2503_v25, %v1300_v52 }
 0x1b6   : > { %v1403_v2 = vadd.f32 %v2510_v34, %v1367_v14  ;;  %v837_v56 = vpop.permute.xlu1 %836  ;;  %v821_v29 = vpop.permute.xlu2 %820 }
 0x1b7   : > { %v1395_v19 = vadd.f32 %v2510_v34, %v1359_v18  ;;  %v808_v59 = vpop.permute.xlu0 %807  ;;  %v1117_v40 = vsel %vm1093_vm8, %v1084_v60, %v837_v56 }
 0x1b8   : > { %v1435_v23 = vmax.f32 %v1403_v2, 0.0  ;;  %v1092_v30 = vsel %vm1060_vm7, %v1059_v39, %v808_v59 }
 0x1b9   : > { %v1427_v49 = vmax.f32 %v1395_v19, 0.0  ;;  %v1125_v27 = vsel %vm1093_vm8, %v1092_v30, %v845_v31 }
 0x1ba   : > { %1467 = vst [vmem:[%s2518_s19 + $0xc8] sm:$0xff] %v1435_v23 }
 0x1bb   : > { %1459 = vst [vmem:[%s2518_s19 + $0x88] sm:$0xff] %v1427_v49 }
 0x1bd   : > { %v1278_v57 = vpop.f32.mrf.mxu1 }
 0x1be   : > { %v1258_v1 = vpop.f32.mrf.mxu0  ;;  %v1350_v50 = vmul.f32 %v2503_v25, %v1278_v57  ;;  %v892_v43 = vpop.permute.xlu1 %891 }
 0x1bf   : > { %v1342_v15 = vmul.f32 %v2503_v25, %v1258_v1  ;;  %v884_v9 = vpop.permute.xlu0 %883  ;;  %v1158_v26 = vsel %vm1126_vm9, %v1125_v27, %v892_v43  ;;  %v876_v33 = vpop.permute.xlu2 %875 }
 0x1c0   : > { %v1386_v53 = vadd.f32 %v2510_v34, %v1350_v50  ;;  %v1150_v38 = vsel %vm1126_vm9, %v1117_v40, %v884_v9 }
 0x1c1   : > { %v1378_v62 = vadd.f32 %v2510_v34, %v1342_v15  ;;  %v1183_v20 = vsel %vm1159_vm10, %v1150_v38, %v919_v36 }
 0x1c2   : > { %v1418_v4 = vmax.f32 %v1386_v53, 0.0  ;;  %1632 = vmatmul.msk.bf16.gmra.mxu2 %vm1212_vm11, %v1183_v20 }
 0x1c3   : > { %v1410_v32 = vmax.f32 %v1378_v62, 0.0 }
 0x1c4   : > { %1450 = vst [vmem:[%s2518_s19 + $0x40] sm:$0xff] %v1418_v4 }
 0x1c5   : > { %1442 = vst [vmem:[%s2518_s19] sm:$0xff] %v1410_v32  ;;  %v1280_v28 = vpop.f32.mrf.mxu1 }
 0x1c6   : > { %v1260_v47 = vpop.f32.mrf.mxu0  ;;  %v1351_v13 = vmul.f32 %v2503_v25, %v1280_v28  ;;  %v749_v12 = vpop.permute.xlu1 %748 }
 0x1c7   : > { %v1343_v46 = vmul.f32 %v2503_v25, %v1260_v47  ;;  %v927_v55 = vpop.permute.xlu0 %926  ;;  %v1035_v5 = vsel %vm1027_vm6, %v2193_v16, %v749_v12 }
 0x1c8   : > { %v1387_v37 = vadd.f32 %v2510_v34, %v1351_v13  ;;  %v1191_v35 = vsel %vm1159_vm10, %v1158_v26, %v927_v55 }
 0x1c9   : > { %v1379_v48 = vadd.f32 %v2510_v34, %v1343_v46  ;;  %1636 = vmatmul.msk.bf16.gmra.mxu3 %vm1212_vm11, %v1191_v35 }
 0x1ca   : > { %v1419_v51 = vmax.f32 %v1387_v37, 0.0 }
 0x1cb   : > { %v1411_v11 = vmax.f32 %v1379_v48, 0.0 }
 0x1cc   : > { %1451 = vst [vmem:[%s2518_s19 + $0x48] sm:$0xff] %v1419_v51 }
 0x1cd   : > { %1443 = vst [vmem:[%s2518_s19 + $0x8] sm:$0xff] %v1411_v11 }
 0x1ce   : > { %v792_v54 = vpop.permute.xlu1 %791 }
 0x1cf   : > { %v784_v41 = vpop.permute.xlu0 %783  ;;  %v1076_v17 = vsel %vm1060_vm7, %v1043_v7, %v792_v54 }
 0x1d0   : > { %v1068_v45 = vsel %vm1060_vm7, %v1035_v5, %v784_v41 }
 0x1d1   : > { %v1101_v61 = vsel %vm1093_vm8, %v1068_v45, %v821_v29 }
 0x1d6   : > { %v868_v22 = vpop.permute.xlu1 %867 }
 0x1d7   : > { %v829_v6 = vpop.permute.xlu0 %828  ;;  %v1134_v42 = vsel %vm1126_vm9, %v1101_v61, %v868_v22 }
 0x1d8   : > { %v1109_v0 = vsel %vm1093_vm8, %v1076_v17, %v829_v6 }
 0x1d9   : > { %v1142_v21 = vsel %vm1126_vm9, %v1109_v0, %v876_v33 }
 0x1db   : > { %v1303_v58 = vpop.f32.mrf.mxu2 }
 0x1dc   : > { %v1360_v44 = vmul.f32 %v2503_v25, %v1303_v58 }
 0x1dd   : > { %v1323_v8 = vpop.f32.mrf.mxu3 }
 0x1de   : > { %v1396_v3 = vadd.f32 %v2510_v34, %v1360_v44  ;;  %v1368_v16 = vmul.f32 %v2503_v25, %v1323_v8  ;;  %v911_v63 = vpop.permute.xlu1 %910 }
 0x1df   : > { %v903_v52 = vpop.permute.xlu0 %902  ;;  %v1175_v14 = vsel %vm1159_vm10, %v1142_v21, %v911_v63 }
 0x1e0   : > { %v1428_v31 = vmax.f32 %v1396_v3, 0.0  ;;  %v1404_v18 = vadd.f32 %v2510_v34, %v1368_v16  ;;  %v1167_v2 = vsel %vm1159_vm10, %v1134_v42, %v903_v52  ;;  %1628 = vmatmul.msk.bf16.gmra.mxu1 %vm1212_vm11, %v1175_v14 }
 0x1e1   : > { %1624 = vmatmul.msk.bf16.gmra.mxu0 %vm1212_vm11, %v1167_v2 }
 0x1e2   : > { %1460 = vst [vmem:[%s2518_s19 + $0x90] sm:$0xff] %v1428_v31  ;;  %v1436_v56 = vmax.f32 %v1404_v18, 0.0 }
 0x1e3   : > { %v1305_v19 = vpop.f32.mrf.mxu2 }
 0x1e4   : > { %1468 = vst [vmem:[%s2518_s19 + $0xd0] sm:$0xff] %v1436_v56  ;;  %v1361_v59 = vmul.f32 %v2503_v25, %v1305_v19 }
 0x1e5   : > { %v1325_v23 = vpop.f32.mrf.mxu3 }
 0x1e6   : > { %v1397_v49 = vadd.f32 %v2510_v34, %v1361_v59  ;;  %v1369_v24 = vmul.f32 %v2503_v25, %v1325_v23 }
 0x1e8   : > { %v1429_v57 = vmax.f32 %v1397_v49, 0.0  ;;  %v1405_v60 = vadd.f32 %v2510_v34, %v1369_v24 }
 0x1ea   : > { %1461 = vst [vmem:[%s2518_s19 + $0x98] sm:$0xff] %v1429_v57  ;;  %v1437_v1 = vmax.f32 %v1405_v60, 0.0 }
 0x1ec   : > { %1469 = vst [vmem:[%s2518_s19 + $0xd8] sm:$0xff] %v1437_v1 }
 0x1ef   : > { %v1263_v50 = vpop.f32.mrf.mxu0 }
 0x1f0   : > { %v1344_v43 = vmul.f32 %v2503_v25, %v1263_v50 }
 0x1f2   : > { %v1380_v36 = vadd.f32 %v2510_v34, %v1344_v43 }
 0x1f4   : > { %v1412_v40 = vmax.f32 %v1380_v36, 0.0 }
 0x1f6   : > { %1444 = vst [vmem:[%s2518_s19 + $0x10] sm:$0xff] %v1412_v40  ;;  %v1283_v15 = vpop.f32.mrf.mxu1 }
 0x1f7   : > { %v1352_v9 = vmul.f32 %v2503_v25, %v1283_v15  ;;  %v1265_v53 = vpop.f32.mrf.mxu0 }
 0x1f8   : > { %v1345_v38 = vmul.f32 %v2503_v25, %v1265_v53 }
 0x1f9   : > { %v1388_v62 = vadd.f32 %v2510_v34, %v1352_v9 }
 0x1fa   : > { %v1381_v20 = vadd.f32 %v2510_v34, %v1345_v38 }
 0x1fb   : > { %v1420_v39 = vmax.f32 %v1388_v62, 0.0 }
 0x1fc   : > { %v1413_v4 = vmax.f32 %v1381_v20, 0.0 }
 0x1fd   : > { %1452 = vst [vmem:[%s2518_s19 + $0x50] sm:$0xff] %v1420_v39 }
 0x1fe   : > { %1445 = vst [vmem:[%s2518_s19 + $0x18] sm:$0xff] %v1413_v4  ;;  %v1285_v30 = vpop.f32.mrf.mxu1 }
 0x1ff   : > { %v1353_v32 = vmul.f32 %v2503_v25, %v1285_v30 }
 0x201   : > { %v1389_v28 = vadd.f32 %v2510_v34, %v1353_v32 }
 0x203   : > { %v1421_v27 = vmax.f32 %v1389_v28, 0.0 }
 0x205   : > { %1453 = vst [vmem:[%s2518_s19 + $0x58] sm:$0xff] %v1421_v27 }
 0x213   : > { %v1328_v47 = vpop.f32.mrf.mxu3 }
 0x214   : > { %v1308_v13 = vpop.f32.mrf.mxu2  ;;  %v1370_v12 = vmul.f32 %v2503_v25, %v1328_v47 }
 0x215   : > { %v1362_v26 = vmul.f32 %v2503_v25, %v1308_v13 }
 0x216   : > { %v1406_v46 = vadd.f32 %v2510_v34, %v1370_v12 }
 0x217   : > { %v1398_v55 = vadd.f32 %v2510_v34, %v1362_v26 }
 0x218   : > { %v1438_v37 = vmax.f32 %v1406_v46, 0.0 }
 0x219   : > { %v1430_v35 = vmax.f32 %v1398_v55, 0.0 }
 0x21a   : > { %1470 = vst [vmem:[%s2518_s19 + $0xe0] sm:$0xff] %v1438_v37 }
 0x21b   : > { %1462 = vst [vmem:[%s2518_s19 + $0xa0] sm:$0xff] %v1430_v35  ;;  %v1330_v10 = vpop.f32.mrf.mxu3 }
 0x21c   : > { %v1310_v48 = vpop.f32.mrf.mxu2  ;;  %v1371_v51 = vmul.f32 %v2503_v25, %v1330_v10 }
 0x21d   : > { %v1363_v11 = vmul.f32 %v2503_v25, %v1310_v48 }
 0x21e   : > { %v1407_v54 = vadd.f32 %v2510_v34, %v1371_v51 }
 0x21f   : > { %v1399_v41 = vadd.f32 %v2510_v34, %v1363_v11 }
 0x220   : > { %v1439_v29 = vmax.f32 %v1407_v54, 0.0 }
 0x221   : > { %v1431_v22 = vmax.f32 %v1399_v41, 0.0 }
 0x222   : > { %1471 = vst [vmem:[%s2518_s19 + $0xe8] sm:$0xff] %v1439_v29 }
 0x223   : > { %1463 = vst [vmem:[%s2518_s19 + $0xa8] sm:$0xff] %v1431_v22 }
 0x225   : > { %v1268_v6 = vpop.f32.mrf.mxu0 }
 0x226   : > { %v1346_v7 = vmul.f32 %v2503_v25, %v1268_v6 }
 0x227   : > { %v1288_v5 = vpop.f32.mrf.mxu1 }
 0x228   : > { %v1382_v17 = vadd.f32 %v2510_v34, %v1346_v7  ;;  %v1354_v45 = vmul.f32 %v2503_v25, %v1288_v5 }
 0x22a   : > { %v1414_v0 = vmax.f32 %v1382_v17, 0.0  ;;  %v1390_v33 = vadd.f32 %v2510_v34, %v1354_v45 }
 0x22c   : > { %1446 = vst [vmem:[%s2518_s19 + $0x20] sm:$0xff] %v1414_v0  ;;  %v1422_v58 = vmax.f32 %v1390_v33, 0.0 }
 0x22d   : > { %v1270_v44 = vpop.f32.mrf.mxu0 }
 0x22e   : > { %1454 = vst [vmem:[%s2518_s19 + $0x60] sm:$0xff] %v1422_v58  ;;  %v1347_v8 = vmul.f32 %v2503_v25, %v1270_v44 }
 0x22f   : > { %v1290_v61 = vpop.f32.mrf.mxu1 }
 0x230   : > { %v1383_v21 = vadd.f32 %v2510_v34, %v1347_v8  ;;  %v1355_v3 = vmul.f32 %v2503_v25, %v1290_v61 }
 0x232   : > { %v1415_v16 = vmax.f32 %v1383_v21, 0.0  ;;  %v1391_v63 = vadd.f32 %v2510_v34, %v1355_v3 }
 0x234   : > { %1447 = vst [vmem:[%s2518_s19 + $0x28] sm:$0xff] %v1415_v16  ;;  %v1423_v42 = vmax.f32 %v1391_v63, 0.0 }
 0x236   : > { %1455 = vst [vmem:[%s2518_s19 + $0x68] sm:$0xff] %v1423_v42 }
 0x245   : > { %v1313_v52 = vpop.f32.mrf.mxu2 }
 0x246   : > { %v1364_v14 = vmul.f32 %v2503_v25, %v1313_v52 }
 0x248   : > { %v1400_v31 = vadd.f32 %v2510_v34, %v1364_v14 }
 0x24a   : > { %v1432_v18 = vmax.f32 %v1400_v31, 0.0 }
 0x24c   : > { %1464 = vst [vmem:[%s2518_s19 + $0xb0] sm:$0xff] %v1432_v18  ;;  %v1333_v2 = vpop.f32.mrf.mxu3 }
 0x24d   : > { %v1372_v56 = vmul.f32 %v2503_v25, %v1333_v2  ;;  %v1315_v19 = vpop.f32.mrf.mxu2 }
 0x24e   : > { %v1365_v59 = vmul.f32 %v2503_v25, %v1315_v19 }
 0x24f   : > { %v1408_v23 = vadd.f32 %v2510_v34, %v1372_v56 }
 0x250   : > { %v1401_v49 = vadd.f32 %v2510_v34, %v1365_v59 }
 0x251   : > { %v1440_v24 = vmax.f32 %v1408_v23, 0.0 }
 0x252   : > { %v1433_v57 = vmax.f32 %v1401_v49, 0.0 }
 0x253   : > { %1472 = vst [vmem:[%s2518_s19 + $0xf0] sm:$0xff] %v1440_v24 }
 0x254   : > { %1465 = vst [vmem:[%s2518_s19 + $0xb8] sm:$0xff] %v1433_v57  ;;  %v1335_v60 = vpop.f32.mrf.mxu3 }
 0x255   : > { %v1373_v1 = vmul.f32 %v2503_v25, %v1335_v60 }
 0x257   : > { %v1409_v50 = vadd.f32 %v2510_v34, %v1373_v1 }
 0x259   : > { %v1441_v43 = vmax.f32 %v1409_v50, 0.0 }
 0x25b   : > { %1473 = vst [vmem:[%s2518_s19 + $0xf8] sm:$0xff] %v1441_v43 }
 0x25d   : > { %v1293_v36 = vpop.f32.mrf.mxu1 }
 0x25e   : > { %v1273_v40 = vpop.f32.mrf.mxu0  ;;  %v1356_v15 = vmul.f32 %v2503_v25, %v1293_v36 }
 0x25f   : > { %v1348_v9 = vmul.f32 %v2503_v25, %v1273_v40 }
 0x260   : > { %v1392_v53 = vadd.f32 %v2510_v34, %v1356_v15 }
 0x261   : > { %v1384_v38 = vadd.f32 %v2510_v34, %v1348_v9 }
 0x262   : > { %v1424_v62 = vmax.f32 %v1392_v53, 0.0 }
 0x263   : > { %v1416_v20 = vmax.f32 %v1384_v38, 0.0 }
 0x264   : > { %1456 = vst [vmem:[%s2518_s19 + $0x70] sm:$0xff] %v1424_v62 }
 0x265   : > { %1448 = vst [vmem:[%s2518_s19 + $0x30] sm:$0xff] %v1416_v20  ;;  %v1295_v39 = vpop.f32.mrf.mxu1 }
 0x266   : > { %v1275_v4 = vpop.f32.mrf.mxu0  ;;  %v1357_v30 = vmul.f32 %v2503_v25, %v1295_v39 }
 0x267   : > { %v1349_v32 = vmul.f32 %v2503_v25, %v1275_v4 }
 0x268   : > { %v1393_v28 = vadd.f32 %v2510_v34, %v1357_v30 }
 0x269   : > { %v1385_v27 = vadd.f32 %v2510_v34, %v1349_v32 }
 0x26a   : > { %v1425_v47 = vmax.f32 %v1393_v28, 0.0 }
 0x26b   : > { %v1417_v13 = vmax.f32 %v1385_v27, 0.0 }
 0x26c   : > { %1457 = vst [vmem:[%s2518_s19 + $0x78] sm:$0xff] %v1425_v47 }
 0x26d   : > { %1449 = vst [vmem:[%s2518_s19 + $0x38] sm:$0xff] %v1417_v13 }
 0x26e PF: > { %s14_s15 = sadd.s32 1, %s1695_s15  }
 0x26f   : > { %p11_p5 = scmp.ge.s32.totalorder %s14_s15, 4  }
 0x271   :  { %13 = sbr.rel (!%p11_p5) target bundleno = 1 (0x1), region = 66 }

</bundles_post_ra>
